<compile_context>
chip_gen: v6e
topology: v6e:2x2x1
jax: 0.10.0
libtpu: 0.0.40
codegen_flags: <defaults>
</compile_context>

<pallas_src>
import functools

import jax
import jax.numpy as jnp
from jax import lax
from jax.experimental import pallas as pl
from jax.experimental.pallas import tpu as pltpu


def _round_up(x, m):
    return (x + m - 1) // m * m


# ----------------------------------------------------------------------------
# Fused kernel: 5 x (depthwise k=3 + pointwise 1x1) + ctc / ae projections
# ----------------------------------------------------------------------------
def fused_encoder_kernel(x_ref, *refs, num_blocks, tile_t, halo, t_real):
    # x_ref : (1, Tpad + 2*halo, Cin_p)  whole (padded) sequence for batch b,
    #         loaded once per b (constant block index across time tiles).
    # refs  : per block (wdw (3,Cp), bdw (1,Cp), wpw (Cp,Cp'), bpw (1,Cp'))*5,
    #         then wctc, bctc, wae, bae, then outputs ctc_ref, ae_ref.
    block_refs = refs[: 4 * num_blocks]
    wctc_ref, bctc_ref, wae_ref, bae_ref = refs[4 * num_blocks: 4 * num_blocks + 4]
    ctc_ref, ae_ref = refs[4 * num_blocks + 4:]

    i = pl.program_id(1)                                   # time-tile index
    start = pl.multiple_of(i * tile_t, 8)
    text = tile_t + 2 * halo
    # Extended tile: absolute frames [i*tile_t - halo, i*tile_t + tile_t + halo)
    act = x_ref[0, pl.ds(start, text), :]

    for l in range(num_blocks):
        wdw_ref, bdw_ref, wpw_ref, bpw_ref = block_refs[4 * l: 4 * l + 4]
        rows = act.shape[0]
        if l > 0:
            # Re-zero frames outside the real sequence so each layer sees the
            # same zero padding as Conv1d(padding=1) at the sequence ends.
            pos = (i * tile_t - halo + l) + lax.broadcasted_iota(
                jnp.int32, (rows, 1), 0)
            act = jnp.where((pos >= 0) & (pos < t_real), act, 0.0)
        # Depthwise k=3 (cross-correlation) on the VPU; halo shrinks by 1/side.
        dw = (wdw_ref[0] * act[0:rows - 2]
              + wdw_ref[1] * act[1:rows - 1]
              + wdw_ref[2] * act[2:rows]
              + bdw_ref[0])
        # Pointwise 1x1 conv -> lane-dense MXU matmul, f32 accumulate.
        act = jnp.dot(dw, wpw_ref[...],
                      preferred_element_type=jnp.float32) + bpw_ref[0]

    # Central tile_t frames are exact (halo >= num_blocks contaminated frames).
    margin = halo - num_blocks
    y = act[margin: margin + tile_t]                       # (tile_t, H_p)

    ctc = jnp.dot(y, wctc_ref[...], preferred_element_type=jnp.float32) + bctc_ref[0]
    ae = jnp.dot(y, wae_ref[...], preferred_element_type=jnp.float32) + bae_ref[0]
    ctc_ref[0] = ctc.astype(ctc_ref.dtype)
    ae_ref[0] = ae.astype(ae_ref.dtype)


# ----------------------------------------------------------------------------
# Wrapper
# ----------------------------------------------------------------------------
def acoustic_encoder_pallas(x_ncw, params, *, tile_t=None):
    """x_ncw: (B, input_dim, T) matching the PyTorch Conv1d layout."""
    num_blocks = len(params["blocks"])
    B, Cin, T = x_ncw.shape
    hidden = params["w_ae"].shape[0]
    num_classes = params["w_ctc"].shape[1]

    Cin_p = _round_up(Cin, 128)
    H_p = _round_up(hidden, 128)
    NC_p = _round_up(num_classes, 128)

    halo = _round_up(num_blocks, 8)            # >= num_blocks, keeps slices 8-aligned
    if tile_t is None:
        tile_t = min(512, _round_up(T, 8))     # ~512-row tiles ~ HBM roofline sweet spot
    tile_t = _round_up(tile_t, 8)
    Tpad = _round_up(T, tile_t)
    n_t = Tpad // tile_t

    # Channels-last + ONE pad of the raw input (halo + ragged tail + lane pad).
    x = jnp.transpose(x_ncw, (0, 2, 1)).astype(jnp.float32)
    x = jnp.pad(x, ((0, 0), (halo, halo + Tpad - T), (0, Cin_p - Cin)))

    # Zero-pad every weight's channel dims up to a multiple of 128 (lane-dense
    # MXU shapes, unmasked stores); padded lanes stay exactly zero end-to-end.
    flat_w = []
    for (w_dw, b_dw, w_pw, b_pw) in params["blocks"]:
        cin, cout = w_pw.shape
        cin_p, cout_p = _round_up(cin, 128), _round_up(cout, 128)
        flat_w += [
            jnp.pad(w_dw, ((0, 0), (0, cin_p - cin))),
            jnp.pad(b_dw, ((0, 0), (0, cin_p - cin))),
            jnp.pad(w_pw, ((0, cin_p - cin), (0, cout_p - cout))),
            jnp.pad(b_pw, ((0, 0), (0, cout_p - cout))),
        ]
    flat_w += [
        jnp.pad(params["w_ctc"], ((0, H_p - hidden), (0, NC_p - num_classes))),
        jnp.pad(params["b_ctc"], ((0, 0), (0, NC_p - num_classes))),
        jnp.pad(params["w_ae"], ((0, H_p - hidden), (0, H_p - hidden))),
        jnp.pad(params["b_ae"], ((0, 0), (0, H_p - hidden))),
    ]
    w_specs = [pl.BlockSpec(w.shape, lambda b, i: (0, 0)) for w in flat_w]

    # Explicit VMEM budget: double-buffered input block + resident weights +
    # in-flight activations + double-buffered output blocks, with headroom.
    est = (2 * (Tpad + 2 * halo) * Cin_p
           + sum(int(w.size) for w in flat_w)
           + 6 * (tile_t + 2 * halo) * max(Cin_p, H_p)
           + 4 * tile_t * (NC_p + H_p)) * 4
    vmem_limit = int(min(64 * 2 ** 20, max(32 * 2 ** 20, 2 * est)))

    kernel = functools.partial(
        fused_encoder_kernel,
        num_blocks=num_blocks, tile_t=tile_t, halo=halo, t_real=T)

    ctc_p, ae_p = pl.pallas_call(
        kernel,
        out_shape=(
            jax.ShapeDtypeStruct((B, Tpad, NC_p), x.dtype),
            jax.ShapeDtypeStruct((B, Tpad, H_p), x.dtype),
        ),
        grid=(B, n_t),
        in_specs=[pl.BlockSpec((1, Tpad + 2 * halo, Cin_p), lambda b, i: (b, 0, 0))]
                 + w_specs,
        out_specs=(
            pl.BlockSpec((1, tile_t, NC_p), lambda b, i: (b, i, 0)),
            pl.BlockSpec((1, tile_t, H_p), lambda b, i: (b, i, 0)),
        ),
        compiler_params=pltpu.CompilerParams(
            dimension_semantics=("parallel", "parallel"),
            vmem_limit_bytes=vmem_limit,
        ),
    )(x, *flat_w)

    return ctc_p[:, :T, :num_classes], ae_p[:, :T, :hidden]


# ----------------------------------------------------------------------------
# Params + pure-JAX reference (the PyTorch spec has no nonlinearity/norm).
# ----------------------------------------------------------------------------
def init_params(key, input_dim, hidden_dim, num_classes, num_blocks=5):
    params = {"blocks": []}
    for i in range(num_blocks):
        cin = input_dim if i == 0 else hidden_dim
        cout = hidden_dim
        key, k1, k2, k3, k4 = jax.random.split(key, 5)
        s_dw = 1.0 / jnp.sqrt(3.0)        # depthwise Conv1d fan_in = 1*k = 3
        s_pw = 1.0 / jnp.sqrt(1.0 * cin)  # pointwise Conv1d fan_in = cin*1
        params["blocks"].append((
            jax.random.uniform(k1, (3, cin), jnp.float32, -s_dw, s_dw),
            jax.random.uniform(k2, (1, cin), jnp.float32, -s_dw, s_dw),
            jax.random.uniform(k3, (cin, cout), jnp.float32, -s_pw, s_pw),
            jax.random.uniform(k4, (1, cout), jnp.float32, -s_pw, s_pw),
        ))
    key, k1, k2, k3, k4 = jax.random.split(key, 5)
    s = 1.0 / jnp.sqrt(1.0 * hidden_dim)
    params["w_ctc"] = jax.random.uniform(k1, (hidden_dim, num_classes), jnp.float32, -s, s)
    params["b_ctc"] = jax.random.uniform(k2, (1, num_classes), jnp.float32, -s, s)
    params["w_ae"] = jax.random.uniform(k3, (hidden_dim, hidden_dim), jnp.float32, -s, s)
    params["b_ae"] = jax.random.uniform(k4, (1, hidden_dim), jnp.float32, -s, s)
    return params


def acoustic_encoder_ref(x_ncw, params):
    x = jnp.transpose(x_ncw, (0, 2, 1))
    for (w_dw, b_dw, w_pw, b_pw) in params["blocks"]:
        T = x.shape[1]
        xp = jnp.pad(x, ((0, 0), (1, 1), (0, 0)))
        dw = (w_dw[0] * xp[:, 0:T] + w_dw[1] * xp[:, 1:T + 1]
              + w_dw[2] * xp[:, 2:T + 2] + b_dw[0])
        x = dw @ w_pw + b_pw[0]
    ctc = x @ params["w_ctc"] + params["b_ctc"][0]
    ae = x @ params["w_ae"] + params["b_ae"][0]
    return ctc, ae


if __name__ == "__main__":
    B, input_dim, T = 2, 8, 16
    hidden_dim, num_classes = 32, 16

    key = jax.random.PRNGKey(0)
    key, kx = jax.random.split(key)
    x = jax.random.normal(kx, (B, input_dim, T), jnp.float32)
    params = init_params(key, input_dim, hidden_dim, num_classes, num_blocks=5)

    fwd = jax.jit(acoustic_encoder_pallas)
    ctc_logits, frame_embeddings = fwd(x, params)
    jax.block_until_ready((ctc_logits, frame_embeddings))

    ctc_ref, ae_ref = acoustic_encoder_ref(x, params)
    assert ctc_logits.shape == (B, T, num_classes)
    assert frame_embeddings.shape == (B, T, hidden_dim)
    assert jnp.allclose(ctc_logits, ctc_ref, atol=1e-4, rtol=1e-4)
    assert jnp.allclose(frame_embeddings, ae_ref, atol=1e-4, rtol=1e-4)

    # Also exercise the multi-tile halo path (3 time tiles + ragged tail).
    T2 = 40
    key, kx2 = jax.random.split(key)
    x2 = jax.random.normal(kx2, (B, input_dim, T2), jnp.float32)
    fwd_tiled = jax.jit(functools.partial(acoustic_encoder_pallas, tile_t=16))
    ctc2, ae2 = fwd_tiled(x2, params)
    jax.block_until_ready((ctc2, ae2))
    ctc2_ref, ae2_ref = acoustic_encoder_ref(x2, params)
    assert jnp.allclose(ctc2, ctc2_ref, atol=1e-4, rtol=1e-4)
    assert jnp.allclose(ae2, ae2_ref, atol=1e-4, rtol=1e-4)

    print("KERNEL_OK")
</pallas_src>

<mosaic_0001>
module attributes {stable_mosaic.version = 11 : i64} {
  func.func @fused_encoder_kernel(%arg0: i32, %arg1: i32, %arg2: memref<1x32x128xf32, #tpu.memory_space<vmem>>, %arg3: memref<3x128xf32, #tpu.memory_space<vmem>>, %arg4: memref<1x128xf32, #tpu.memory_space<vmem>>, %arg5: memref<128x128xf32, #tpu.memory_space<vmem>>, %arg6: memref<1x128xf32, #tpu.memory_space<vmem>>, %arg7: memref<3x128xf32, #tpu.memory_space<vmem>>, %arg8: memref<1x128xf32, #tpu.memory_space<vmem>>, %arg9: memref<128x128xf32, #tpu.memory_space<vmem>>, %arg10: memref<1x128xf32, #tpu.memory_space<vmem>>, %arg11: memref<3x128xf32, #tpu.memory_space<vmem>>, %arg12: memref<1x128xf32, #tpu.memory_space<vmem>>, %arg13: memref<128x128xf32, #tpu.memory_space<vmem>>, %arg14: memref<1x128xf32, #tpu.memory_space<vmem>>, %arg15: memref<3x128xf32, #tpu.memory_space<vmem>>, %arg16: memref<1x128xf32, #tpu.memory_space<vmem>>, %arg17: memref<128x128xf32, #tpu.memory_space<vmem>>, %arg18: memref<1x128xf32, #tpu.memory_space<vmem>>, %arg19: memref<3x128xf32, #tpu.memory_space<vmem>>, %arg20: memref<1x128xf32, #tpu.memory_space<vmem>>, %arg21: memref<128x128xf32, #tpu.memory_space<vmem>>, %arg22: memref<1x128xf32, #tpu.memory_space<vmem>>, %arg23: memref<128x128xf32, #tpu.memory_space<vmem>>, %arg24: memref<1x128xf32, #tpu.memory_space<vmem>>, %arg25: memref<128x128xf32, #tpu.memory_space<vmem>>, %arg26: memref<1x128xf32, #tpu.memory_space<vmem>>, %arg27: memref<1x16x128xf32, #tpu.memory_space<vmem>>, %arg28: memref<1x16x128xf32, #tpu.memory_space<vmem>>) attributes {dimension_semantics = [#tpu.dimension_semantics<parallel>, #tpu.dimension_semantics<parallel>], iteration_bounds = array<i64: 2, 1>, scalar_prefetch = 0 : i64, scratch_operands = 0 : i64, tpu.core_type = #tpu.core_type<tc>, window_params = [{transform_indices = @transform_0, window_bounds = array<i64: 1, 32, 128>}, {pipeline_mode = #tpu.pipeline_mode<synchronous>, transform_indices = @transform_1, window_bounds = array<i64: 3, 128>}, {pipeline_mode = #tpu.pipeline_mode<synchronous>, transform_indices = @transform_2, window_bounds = array<i64: 1, 128>}, {pipeline_mode = #tpu.pipeline_mode<synchronous>, transform_indices = @transform_3, window_bounds = array<i64: 128, 128>}, {pipeline_mode = #tpu.pipeline_mode<synchronous>, transform_indices = @transform_4, window_bounds = array<i64: 1, 128>}, {pipeline_mode = #tpu.pipeline_mode<synchronous>, transform_indices = @transform_5, window_bounds = array<i64: 3, 128>}, {pipeline_mode = #tpu.pipeline_mode<synchronous>, transform_indices = @transform_6, window_bounds = array<i64: 1, 128>}, {pipeline_mode = #tpu.pipeline_mode<synchronous>, transform_indices = @transform_7, window_bounds = array<i64: 128, 128>}, {pipeline_mode = #tpu.pipeline_mode<synchronous>, transform_indices = @transform_8, window_bounds = array<i64: 1, 128>}, {pipeline_mode = #tpu.pipeline_mode<synchronous>, transform_indices = @transform_9, window_bounds = array<i64: 3, 128>}, {pipeline_mode = #tpu.pipeline_mode<synchronous>, transform_indices = @transform_10, window_bounds = array<i64: 1, 128>}, {pipeline_mode = #tpu.pipeline_mode<synchronous>, transform_indices = @transform_11, window_bounds = array<i64: 128, 128>}, {pipeline_mode = #tpu.pipeline_mode<synchronous>, transform_indices = @transform_12, window_bounds = array<i64: 1, 128>}, {pipeline_mode = #tpu.pipeline_mode<synchronous>, transform_indices = @transform_13, window_bounds = array<i64: 3, 128>}, {pipeline_mode = #tpu.pipeline_mode<synchronous>, transform_indices = @transform_14, window_bounds = array<i64: 1, 128>}, {pipeline_mode = #tpu.pipeline_mode<synchronous>, transform_indices = @transform_15, window_bounds = array<i64: 128, 128>}, {pipeline_mode = #tpu.pipeline_mode<synchronous>, transform_indices = @transform_16, window_bounds = array<i64: 1, 128>}, {pipeline_mode = #tpu.pipeline_mode<synchronous>, transform_indices = @transform_17, window_bounds = array<i64: 3, 128>}, {pipeline_mode = #tpu.pipeline_mode<synchronous>, transform_indices = @transform_18, window_bounds = array<i64: 1, 128>}, {pipeline_mode = #tpu.pipeline_mode<synchronous>, transform_indices = @transform_19, window_bounds = array<i64: 128, 128>}, {pipeline_mode = #tpu.pipeline_mode<synchronous>, transform_indices = @transform_20, window_bounds = array<i64: 1, 128>}, {pipeline_mode = #tpu.pipeline_mode<synchronous>, transform_indices = @transform_21, window_bounds = array<i64: 128, 128>}, {pipeline_mode = #tpu.pipeline_mode<synchronous>, transform_indices = @transform_22, window_bounds = array<i64: 1, 128>}, {pipeline_mode = #tpu.pipeline_mode<synchronous>, transform_indices = @transform_23, window_bounds = array<i64: 128, 128>}, {pipeline_mode = #tpu.pipeline_mode<synchronous>, transform_indices = @transform_24, window_bounds = array<i64: 1, 128>}, {transform_indices = @transform_25, window_bounds = array<i64: 1, 16, 128>}, {transform_indices = @transform_26, window_bounds = array<i64: 1, 16, 128>}]} {
    %c16_i32 = arith.constant 16 : i32
    %0 = arith.muli %arg1, %c16_i32 : i32
    %1 = tpu.assume_multiple %0, 8 : i32
    %c0 = arith.constant 0 : index
    %2 = arith.index_cast %1 : i32 to index
    %c0_0 = arith.constant 0 : index
    %3 = vector.load %arg2[%c0, %2, %c0_0] : memref<1x32x128xf32, #tpu.memory_space<vmem>>, vector<1x32x128xf32>
    %4 = vector.shape_cast %3 : vector<1x32x128xf32> to vector<32x128xf32>
    %c0_1 = arith.constant 0 : index
    %c0_2 = arith.constant 0 : index
    %5 = vector.load %arg3[%c0_1, %c0_2] : memref<3x128xf32, #tpu.memory_space<vmem>>, vector<1x128xf32>
    %6 = vector.shape_cast %5 : vector<1x128xf32> to vector<128xf32>
    %7 = vector.extract_strided_slice %4 {offsets = [0, 0], sizes = [30, 128], strides = [1, 1]} : vector<32x128xf32> to vector<30x128xf32>
    %8 = vector.shape_cast %6 : vector<128xf32> to vector<1x128xf32>
    %9 = vector.broadcast %8 : vector<1x128xf32> to vector<30x128xf32>
    %10 = arith.mulf %9, %7 : vector<30x128xf32>
    %c1 = arith.constant 1 : index
    %c0_3 = arith.constant 0 : index
    %11 = vector.load %arg3[%c1, %c0_3] : memref<3x128xf32, #tpu.memory_space<vmem>>, vector<1x128xf32>
    %12 = vector.shape_cast %11 : vector<1x128xf32> to vector<128xf32>
    %13 = vector.extract_strided_slice %4 {offsets = [1, 0], sizes = [30, 128], strides = [1, 1]} : vector<32x128xf32> to vector<30x128xf32>
    %14 = vector.shape_cast %12 : vector<128xf32> to vector<1x128xf32>
    %15 = vector.broadcast %14 : vector<1x128xf32> to vector<30x128xf32>
    %16 = arith.mulf %15, %13 : vector<30x128xf32>
    %17 = arith.addf %10, %16 : vector<30x128xf32>
    %c2 = arith.constant 2 : index
    %c0_4 = arith.constant 0 : index
    %18 = vector.load %arg3[%c2, %c0_4] : memref<3x128xf32, #tpu.memory_space<vmem>>, vector<1x128xf32>
    %19 = vector.shape_cast %18 : vector<1x128xf32> to vector<128xf32>
    %20 = vector.extract_strided_slice %4 {offsets = [2, 0], sizes = [30, 128], strides = [1, 1]} : vector<32x128xf32> to vector<30x128xf32>
    %21 = vector.shape_cast %19 : vector<128xf32> to vector<1x128xf32>
    %22 = vector.broadcast %21 : vector<1x128xf32> to vector<30x128xf32>
    %23 = arith.mulf %22, %20 : vector<30x128xf32>
    %24 = arith.addf %17, %23 : vector<30x128xf32>
    %c0_5 = arith.constant 0 : index
    %c0_6 = arith.constant 0 : index
    %25 = vector.load %arg4[%c0_5, %c0_6] : memref<1x128xf32, #tpu.memory_space<vmem>>, vector<1x128xf32>
    %26 = vector.shape_cast %25 : vector<1x128xf32> to vector<128xf32>
    %27 = vector.shape_cast %26 : vector<128xf32> to vector<1x128xf32>
    %28 = vector.broadcast %27 : vector<1x128xf32> to vector<30x128xf32>
    %29 = arith.addf %24, %28 : vector<30x128xf32>
    %c0_7 = arith.constant 0 : index
    %c0_8 = arith.constant 0 : index
    %30 = vector.load %arg5[%c0_7, %c0_8] : memref<128x128xf32, #tpu.memory_space<vmem>>, vector<128x128xf32>
    %cst = arith.constant dense<0.000000e+00> : vector<30x128xf32>
    %31 = tpu.matmul %29, %30, %cst {dimension_numbers = #tpu.dot_dimension_numbers<[1], [0], [0], [1], [0, 0, 1, 1], [], []>} : vector<30x128xf32>, vector<128x128xf32>, vector<30x128xf32> -> vector<30x128xf32>
    %c0_9 = arith.constant 0 : index
    %c0_10 = arith.constant 0 : index
    %32 = vector.load %arg6[%c0_9, %c0_10] : memref<1x128xf32, #tpu.memory_space<vmem>>, vector<1x128xf32>
    %33 = vector.shape_cast %32 : vector<1x128xf32> to vector<128xf32>
    %34 = vector.shape_cast %33 : vector<128xf32> to vector<1x128xf32>
    %35 = vector.broadcast %34 : vector<1x128xf32> to vector<30x128xf32>
    %36 = arith.addf %31, %35 : vector<30x128xf32>
    %c16_i32_11 = arith.constant 16 : i32
    %37 = arith.muli %arg1, %c16_i32_11 : i32
    %c8_i32 = arith.constant 8 : i32
    %38 = arith.subi %37, %c8_i32 : i32
    %c1_i32 = arith.constant 1 : i32
    %39 = arith.addi %38, %c1_i32 : i32
    %40 = tpu.iota {dimensions = array<i32: 0>} : vector<30x1xi32>
    %41 = vector.broadcast %39 : i32 to vector<30x1xi32>
    %42 = arith.addi %41, %40 : vector<30x1xi32>
    %c0_i32 = arith.constant 0 : i32
    %43 = vector.broadcast %c0_i32 : i32 to vector<30x1xi32>
    %44 = arith.cmpi sge, %42, %43 : vector<30x1xi32>
    %c16_i32_12 = arith.constant 16 : i32
    %45 = vector.broadcast %c16_i32_12 : i32 to vector<30x1xi32>
    %46 = arith.cmpi slt, %42, %45 : vector<30x1xi32>
    %47 = arith.andi %44, %46 : vector<30x1xi1>
    %cst_13 = arith.constant 0.000000e+00 : f32
    %48 = vector.shape_cast %47 : vector<30x1xi1> to vector<30x1xi1>
    %49 = vector.broadcast %48 : vector<30x1xi1> to vector<30x128xi1>
    %50 = vector.broadcast %cst_13 : f32 to vector<30x128xf32>
    %51 = arith.select %49, %36, %50 : vector<30x128xi1>, vector<30x128xf32>
    %c0_14 = arith.constant 0 : index
    %c0_15 = arith.constant 0 : index
    %52 = vector.load %arg7[%c0_14, %c0_15] : memref<3x128xf32, #tpu.memory_space<vmem>>, vector<1x128xf32>
    %53 = vector.shape_cast %52 : vector<1x128xf32> to vector<128xf32>
    %54 = vector.extract_strided_slice %51 {offsets = [0, 0], sizes = [28, 128], strides = [1, 1]} : vector<30x128xf32> to vector<28x128xf32>
    %55 = vector.shape_cast %53 : vector<128xf32> to vector<1x128xf32>
    %56 = vector.broadcast %55 : vector<1x128xf32> to vector<28x128xf32>
    %57 = arith.mulf %56, %54 : vector<28x128xf32>
    %c1_16 = arith.constant 1 : index
    %c0_17 = arith.constant 0 : index
    %58 = vector.load %arg7[%c1_16, %c0_17] : memref<3x128xf32, #tpu.memory_space<vmem>>, vector<1x128xf32>
    %59 = vector.shape_cast %58 : vector<1x128xf32> to vector<128xf32>
    %60 = vector.extract_strided_slice %51 {offsets = [1, 0], sizes = [28, 128], strides = [1, 1]} : vector<30x128xf32> to vector<28x128xf32>
    %61 = vector.shape_cast %59 : vector<128xf32> to vector<1x128xf32>
    %62 = vector.broadcast %61 : vector<1x128xf32> to vector<28x128xf32>
    %63 = arith.mulf %62, %60 : vector<28x128xf32>
    %64 = arith.addf %57, %63 : vector<28x128xf32>
    %c2_18 = arith.constant 2 : index
    %c0_19 = arith.constant 0 : index
    %65 = vector.load %arg7[%c2_18, %c0_19] : memref<3x128xf32, #tpu.memory_space<vmem>>, vector<1x128xf32>
    %66 = vector.shape_cast %65 : vector<1x128xf32> to vector<128xf32>
    %67 = vector.extract_strided_slice %51 {offsets = [2, 0], sizes = [28, 128], strides = [1, 1]} : vector<30x128xf32> to vector<28x128xf32>
    %68 = vector.shape_cast %66 : vector<128xf32> to vector<1x128xf32>
    %69 = vector.broadcast %68 : vector<1x128xf32> to vector<28x128xf32>
    %70 = arith.mulf %69, %67 : vector<28x128xf32>
    %71 = arith.addf %64, %70 : vector<28x128xf32>
    %c0_20 = arith.constant 0 : index
    %c0_21 = arith.constant 0 : index
    %72 = vector.load %arg8[%c0_20, %c0_21] : memref<1x128xf32, #tpu.memory_space<vmem>>, vector<1x128xf32>
    %73 = vector.shape_cast %72 : vector<1x128xf32> to vector<128xf32>
    %74 = vector.shape_cast %73 : vector<128xf32> to vector<1x128xf32>
    %75 = vector.broadcast %74 : vector<1x128xf32> to vector<28x128xf32>
    %76 = arith.addf %71, %75 : vector<28x128xf32>
    %c0_22 = arith.constant 0 : index
    %c0_23 = arith.constant 0 : index
    %77 = vector.load %arg9[%c0_22, %c0_23] : memref<128x128xf32, #tpu.memory_space<vmem>>, vector<128x128xf32>
    %cst_24 = arith.constant dense<0.000000e+00> : vector<28x128xf32>
    %78 = tpu.matmul %76, %77, %cst_24 {dimension_numbers = #tpu.dot_dimension_numbers<[1], [0], [0], [1], [0, 0, 1, 1], [], []>} : vector<28x128xf32>, vector<128x128xf32>, vector<28x128xf32> -> vector<28x128xf32>
    %c0_25 = arith.constant 0 : index
    %c0_26 = arith.constant 0 : index
    %79 = vector.load %arg10[%c0_25, %c0_26] : memref<1x128xf32, #tpu.memory_space<vmem>>, vector<1x128xf32>
    %80 = vector.shape_cast %79 : vector<1x128xf32> to vector<128xf32>
    %81 = vector.shape_cast %80 : vector<128xf32> to vector<1x128xf32>
    %82 = vector.broadcast %81 : vector<1x128xf32> to vector<28x128xf32>
    %83 = arith.addf %78, %82 : vector<28x128xf32>
    %c16_i32_27 = arith.constant 16 : i32
    %84 = arith.muli %arg1, %c16_i32_27 : i32
    %c8_i32_28 = arith.constant 8 : i32
    %85 = arith.subi %84, %c8_i32_28 : i32
    %c2_i32 = arith.constant 2 : i32
    %86 = arith.addi %85, %c2_i32 : i32
    %87 = tpu.iota {dimensions = array<i32: 0>} : vector<28x1xi32>
    %88 = vector.broadcast %86 : i32 to vector<28x1xi32>
    %89 = arith.addi %88, %87 : vector<28x1xi32>
    %c0_i32_29 = arith.constant 0 : i32
    %90 = vector.broadcast %c0_i32_29 : i32 to vector<28x1xi32>
    %91 = arith.cmpi sge, %89, %90 : vector<28x1xi32>
    %c16_i32_30 = arith.constant 16 : i32
    %92 = vector.broadcast %c16_i32_30 : i32 to vector<28x1xi32>
    %93 = arith.cmpi slt, %89, %92 : vector<28x1xi32>
    %94 = arith.andi %91, %93 : vector<28x1xi1>
    %cst_31 = arith.constant 0.000000e+00 : f32
    %95 = vector.shape_cast %94 : vector<28x1xi1> to vector<28x1xi1>
    %96 = vector.broadcast %95 : vector<28x1xi1> to vector<28x128xi1>
    %97 = vector.broadcast %cst_31 : f32 to vector<28x128xf32>
    %98 = arith.select %96, %83, %97 : vector<28x128xi1>, vector<28x128xf32>
    %c0_32 = arith.constant 0 : index
    %c0_33 = arith.constant 0 : index
    %99 = vector.load %arg11[%c0_32, %c0_33] : memref<3x128xf32, #tpu.memory_space<vmem>>, vector<1x128xf32>
    %100 = vector.shape_cast %99 : vector<1x128xf32> to vector<128xf32>
    %101 = vector.extract_strided_slice %98 {offsets = [0, 0], sizes = [26, 128], strides = [1, 1]} : vector<28x128xf32> to vector<26x128xf32>
    %102 = vector.shape_cast %100 : vector<128xf32> to vector<1x128xf32>
    %103 = vector.broadcast %102 : vector<1x128xf32> to vector<26x128xf32>
    %104 = arith.mulf %103, %101 : vector<26x128xf32>
    %c1_34 = arith.constant 1 : index
    %c0_35 = arith.constant 0 : index
    %105 = vector.load %arg11[%c1_34, %c0_35] : memref<3x128xf32, #tpu.memory_space<vmem>>, vector<1x128xf32>
    %106 = vector.shape_cast %105 : vector<1x128xf32> to vector<128xf32>
    %107 = vector.extract_strided_slice %98 {offsets = [1, 0], sizes = [26, 128], strides = [1, 1]} : vector<28x128xf32> to vector<26x128xf32>
    %108 = vector.shape_cast %106 : vector<128xf32> to vector<1x128xf32>
    %109 = vector.broadcast %108 : vector<1x128xf32> to vector<26x128xf32>
    %110 = arith.mulf %109, %107 : vector<26x128xf32>
    %111 = arith.addf %104, %110 : vector<26x128xf32>
    %c2_36 = arith.constant 2 : index
    %c0_37 = arith.constant 0 : index
    %112 = vector.load %arg11[%c2_36, %c0_37] : memref<3x128xf32, #tpu.memory_space<vmem>>, vector<1x128xf32>
    %113 = vector.shape_cast %112 : vector<1x128xf32> to vector<128xf32>
    %114 = vector.extract_strided_slice %98 {offsets = [2, 0], sizes = [26, 128], strides = [1, 1]} : vector<28x128xf32> to vector<26x128xf32>
    %115 = vector.shape_cast %113 : vector<128xf32> to vector<1x128xf32>
    %116 = vector.broadcast %115 : vector<1x128xf32> to vector<26x128xf32>
    %117 = arith.mulf %116, %114 : vector<26x128xf32>
    %118 = arith.addf %111, %117 : vector<26x128xf32>
    %c0_38 = arith.constant 0 : index
    %c0_39 = arith.constant 0 : index
    %119 = vector.load %arg12[%c0_38, %c0_39] : memref<1x128xf32, #tpu.memory_space<vmem>>, vector<1x128xf32>
    %120 = vector.shape_cast %119 : vector<1x128xf32> to vector<128xf32>
    %121 = vector.shape_cast %120 : vector<128xf32> to vector<1x128xf32>
    %122 = vector.broadcast %121 : vector<1x128xf32> to vector<26x128xf32>
    %123 = arith.addf %118, %122 : vector<26x128xf32>
    %c0_40 = arith.constant 0 : index
    %c0_41 = arith.constant 0 : index
    %124 = vector.load %arg13[%c0_40, %c0_41] : memref<128x128xf32, #tpu.memory_space<vmem>>, vector<128x128xf32>
    %cst_42 = arith.constant dense<0.000000e+00> : vector<26x128xf32>
    %125 = tpu.matmul %123, %124, %cst_42 {dimension_numbers = #tpu.dot_dimension_numbers<[1], [0], [0], [1], [0, 0, 1, 1], [], []>} : vector<26x128xf32>, vector<128x128xf32>, vector<26x128xf32> -> vector<26x128xf32>
    %c0_43 = arith.constant 0 : index
    %c0_44 = arith.constant 0 : index
    %126 = vector.load %arg14[%c0_43, %c0_44] : memref<1x128xf32, #tpu.memory_space<vmem>>, vector<1x128xf32>
    %127 = vector.shape_cast %126 : vector<1x128xf32> to vector<128xf32>
    %128 = vector.shape_cast %127 : vector<128xf32> to vector<1x128xf32>
    %129 = vector.broadcast %128 : vector<1x128xf32> to vector<26x128xf32>
    %130 = arith.addf %125, %129 : vector<26x128xf32>
    %c16_i32_45 = arith.constant 16 : i32
    %131 = arith.muli %arg1, %c16_i32_45 : i32
    %c8_i32_46 = arith.constant 8 : i32
    %132 = arith.subi %131, %c8_i32_46 : i32
    %c3_i32 = arith.constant 3 : i32
    %133 = arith.addi %132, %c3_i32 : i32
    %134 = tpu.iota {dimensions = array<i32: 0>} : vector<26x1xi32>
    %135 = vector.broadcast %133 : i32 to vector<26x1xi32>
    %136 = arith.addi %135, %134 : vector<26x1xi32>
    %c0_i32_47 = arith.constant 0 : i32
    %137 = vector.broadcast %c0_i32_47 : i32 to vector<26x1xi32>
    %138 = arith.cmpi sge, %136, %137 : vector<26x1xi32>
    %c16_i32_48 = arith.constant 16 : i32
    %139 = vector.broadcast %c16_i32_48 : i32 to vector<26x1xi32>
    %140 = arith.cmpi slt, %136, %139 : vector<26x1xi32>
    %141 = arith.andi %138, %140 : vector<26x1xi1>
    %cst_49 = arith.constant 0.000000e+00 : f32
    %142 = vector.shape_cast %141 : vector<26x1xi1> to vector<26x1xi1>
    %143 = vector.broadcast %142 : vector<26x1xi1> to vector<26x128xi1>
    %144 = vector.broadcast %cst_49 : f32 to vector<26x128xf32>
    %145 = arith.select %143, %130, %144 : vector<26x128xi1>, vector<26x128xf32>
    %c0_50 = arith.constant 0 : index
    %c0_51 = arith.constant 0 : index
    %146 = vector.load %arg15[%c0_50, %c0_51] : memref<3x128xf32, #tpu.memory_space<vmem>>, vector<1x128xf32>
    %147 = vector.shape_cast %146 : vector<1x128xf32> to vector<128xf32>
    %148 = vector.extract_strided_slice %145 {offsets = [0, 0], sizes = [24, 128], strides = [1, 1]} : vector<26x128xf32> to vector<24x128xf32>
    %149 = vector.shape_cast %147 : vector<128xf32> to vector<1x128xf32>
    %150 = vector.broadcast %149 : vector<1x128xf32> to vector<24x128xf32>
    %151 = arith.mulf %150, %148 : vector<24x128xf32>
    %c1_52 = arith.constant 1 : index
    %c0_53 = arith.constant 0 : index
    %152 = vector.load %arg15[%c1_52, %c0_53] : memref<3x128xf32, #tpu.memory_space<vmem>>, vector<1x128xf32>
    %153 = vector.shape_cast %152 : vector<1x128xf32> to vector<128xf32>
    %154 = vector.extract_strided_slice %145 {offsets = [1, 0], sizes = [24, 128], strides = [1, 1]} : vector<26x128xf32> to vector<24x128xf32>
    %155 = vector.shape_cast %153 : vector<128xf32> to vector<1x128xf32>
    %156 = vector.broadcast %155 : vector<1x128xf32> to vector<24x128xf32>
    %157 = arith.mulf %156, %154 : vector<24x128xf32>
    %158 = arith.addf %151, %157 : vector<24x128xf32>
    %c2_54 = arith.constant 2 : index
    %c0_55 = arith.constant 0 : index
    %159 = vector.load %arg15[%c2_54, %c0_55] : memref<3x128xf32, #tpu.memory_space<vmem>>, vector<1x128xf32>
    %160 = vector.shape_cast %159 : vector<1x128xf32> to vector<128xf32>
    %161 = vector.extract_strided_slice %145 {offsets = [2, 0], sizes = [24, 128], strides = [1, 1]} : vector<26x128xf32> to vector<24x128xf32>
    %162 = vector.shape_cast %160 : vector<128xf32> to vector<1x128xf32>
    %163 = vector.broadcast %162 : vector<1x128xf32> to vector<24x128xf32>
    %164 = arith.mulf %163, %161 : vector<24x128xf32>
    %165 = arith.addf %158, %164 : vector<24x128xf32>
    %c0_56 = arith.constant 0 : index
    %c0_57 = arith.constant 0 : index
    %166 = vector.load %arg16[%c0_56, %c0_57] : memref<1x128xf32, #tpu.memory_space<vmem>>, vector<1x128xf32>
    %167 = vector.shape_cast %166 : vector<1x128xf32> to vector<128xf32>
    %168 = vector.shape_cast %167 : vector<128xf32> to vector<1x128xf32>
    %169 = vector.broadcast %168 : vector<1x128xf32> to vector<24x128xf32>
    %170 = arith.addf %165, %169 : vector<24x128xf32>
    %c0_58 = arith.constant 0 : index
    %c0_59 = arith.constant 0 : index
    %171 = vector.load %arg17[%c0_58, %c0_59] : memref<128x128xf32, #tpu.memory_space<vmem>>, vector<128x128xf32>
    %cst_60 = arith.constant dense<0.000000e+00> : vector<24x128xf32>
    %172 = tpu.matmul %170, %171, %cst_60 {dimension_numbers = #tpu.dot_dimension_numbers<[1], [0], [0], [1], [0, 0, 1, 1], [], []>} : vector<24x128xf32>, vector<128x128xf32>, vector<24x128xf32> -> vector<24x128xf32>
    %c0_61 = arith.constant 0 : index
    %c0_62 = arith.constant 0 : index
    %173 = vector.load %arg18[%c0_61, %c0_62] : memref<1x128xf32, #tpu.memory_space<vmem>>, vector<1x128xf32>
    %174 = vector.shape_cast %173 : vector<1x128xf32> to vector<128xf32>
    %175 = vector.shape_cast %174 : vector<128xf32> to vector<1x128xf32>
    %176 = vector.broadcast %175 : vector<1x128xf32> to vector<24x128xf32>
    %177 = arith.addf %172, %176 : vector<24x128xf32>
    %c16_i32_63 = arith.constant 16 : i32
    %178 = arith.muli %arg1, %c16_i32_63 : i32
    %c8_i32_64 = arith.constant 8 : i32
    %179 = arith.subi %178, %c8_i32_64 : i32
    %c4_i32 = arith.constant 4 : i32
    %180 = arith.addi %179, %c4_i32 : i32
    %181 = tpu.iota {dimensions = array<i32: 0>} : vector<24x1xi32>
    %182 = vector.broadcast %180 : i32 to vector<24x1xi32>
    %183 = arith.addi %182, %181 : vector<24x1xi32>
    %c0_i32_65 = arith.constant 0 : i32
    %184 = vector.broadcast %c0_i32_65 : i32 to vector<24x1xi32>
    %185 = arith.cmpi sge, %183, %184 : vector<24x1xi32>
    %c16_i32_66 = arith.constant 16 : i32
    %186 = vector.broadcast %c16_i32_66 : i32 to vector<24x1xi32>
    %187 = arith.cmpi slt, %183, %186 : vector<24x1xi32>
    %188 = arith.andi %185, %187 : vector<24x1xi1>
    %cst_67 = arith.constant 0.000000e+00 : f32
    %189 = vector.shape_cast %188 : vector<24x1xi1> to vector<24x1xi1>
    %190 = vector.broadcast %189 : vector<24x1xi1> to vector<24x128xi1>
    %191 = vector.broadcast %cst_67 : f32 to vector<24x128xf32>
    %192 = arith.select %190, %177, %191 : vector<24x128xi1>, vector<24x128xf32>
    %c0_68 = arith.constant 0 : index
    %c0_69 = arith.constant 0 : index
    %193 = vector.load %arg19[%c0_68, %c0_69] : memref<3x128xf32, #tpu.memory_space<vmem>>, vector<1x128xf32>
    %194 = vector.shape_cast %193 : vector<1x128xf32> to vector<128xf32>
    %195 = vector.extract_strided_slice %192 {offsets = [0, 0], sizes = [22, 128], strides = [1, 1]} : vector<24x128xf32> to vector<22x128xf32>
    %196 = vector.shape_cast %194 : vector<128xf32> to vector<1x128xf32>
    %197 = vector.broadcast %196 : vector<1x128xf32> to vector<22x128xf32>
    %198 = arith.mulf %197, %195 : vector<22x128xf32>
    %c1_70 = arith.constant 1 : index
    %c0_71 = arith.constant 0 : index
    %199 = vector.load %arg19[%c1_70, %c0_71] : memref<3x128xf32, #tpu.memory_space<vmem>>, vector<1x128xf32>
    %200 = vector.shape_cast %199 : vector<1x128xf32> to vector<128xf32>
    %201 = vector.extract_strided_slice %192 {offsets = [1, 0], sizes = [22, 128], strides = [1, 1]} : vector<24x128xf32> to vector<22x128xf32>
    %202 = vector.shape_cast %200 : vector<128xf32> to vector<1x128xf32>
    %203 = vector.broadcast %202 : vector<1x128xf32> to vector<22x128xf32>
    %204 = arith.mulf %203, %201 : vector<22x128xf32>
    %205 = arith.addf %198, %204 : vector<22x128xf32>
    %c2_72 = arith.constant 2 : index
    %c0_73 = arith.constant 0 : index
    %206 = vector.load %arg19[%c2_72, %c0_73] : memref<3x128xf32, #tpu.memory_space<vmem>>, vector<1x128xf32>
    %207 = vector.shape_cast %206 : vector<1x128xf32> to vector<128xf32>
    %208 = vector.extract_strided_slice %192 {offsets = [2, 0], sizes = [22, 128], strides = [1, 1]} : vector<24x128xf32> to vector<22x128xf32>
    %209 = vector.shape_cast %207 : vector<128xf32> to vector<1x128xf32>
    %210 = vector.broadcast %209 : vector<1x128xf32> to vector<22x128xf32>
    %211 = arith.mulf %210, %208 : vector<22x128xf32>
    %212 = arith.addf %205, %211 : vector<22x128xf32>
    %c0_74 = arith.constant 0 : index
    %c0_75 = arith.constant 0 : index
    %213 = vector.load %arg20[%c0_74, %c0_75] : memref<1x128xf32, #tpu.memory_space<vmem>>, vector<1x128xf32>
    %214 = vector.shape_cast %213 : vector<1x128xf32> to vector<128xf32>
    %215 = vector.shape_cast %214 : vector<128xf32> to vector<1x128xf32>
    %216 = vector.broadcast %215 : vector<1x128xf32> to vector<22x128xf32>
    %217 = arith.addf %212, %216 : vector<22x128xf32>
    %c0_76 = arith.constant 0 : index
    %c0_77 = arith.constant 0 : index
    %218 = vector.load %arg21[%c0_76, %c0_77] : memref<128x128xf32, #tpu.memory_space<vmem>>, vector<128x128xf32>
    %cst_78 = arith.constant dense<0.000000e+00> : vector<22x128xf32>
    %219 = tpu.matmul %217, %218, %cst_78 {dimension_numbers = #tpu.dot_dimension_numbers<[1], [0], [0], [1], [0, 0, 1, 1], [], []>} : vector<22x128xf32>, vector<128x128xf32>, vector<22x128xf32> -> vector<22x128xf32>
    %c0_79 = arith.constant 0 : index
    %c0_80 = arith.constant 0 : index
    %220 = vector.load %arg22[%c0_79, %c0_80] : memref<1x128xf32, #tpu.memory_space<vmem>>, vector<1x128xf32>
    %221 = vector.shape_cast %220 : vector<1x128xf32> to vector<128xf32>
    %222 = vector.shape_cast %221 : vector<128xf32> to vector<1x128xf32>
    %223 = vector.broadcast %222 : vector<1x128xf32> to vector<22x128xf32>
    %224 = arith.addf %219, %223 : vector<22x128xf32>
    %225 = vector.extract_strided_slice %224 {offsets = [3, 0], sizes = [16, 128], strides = [1, 1]} : vector<22x128xf32> to vector<16x128xf32>
    %c0_81 = arith.constant 0 : index
    %c0_82 = arith.constant 0 : index
    %226 = vector.load %arg23[%c0_81, %c0_82] : memref<128x128xf32, #tpu.memory_space<vmem>>, vector<128x128xf32>
    %cst_83 = arith.constant dense<0.000000e+00> : vector<16x128xf32>
    %227 = tpu.matmul %225, %226, %cst_83 {dimension_numbers = #tpu.dot_dimension_numbers<[1], [0], [0], [1], [0, 0, 1, 1], [], []>} : vector<16x128xf32>, vector<128x128xf32>, vector<16x128xf32> -> vector<16x128xf32>
    %c0_84 = arith.constant 0 : index
    %c0_85 = arith.constant 0 : index
    %228 = vector.load %arg24[%c0_84, %c0_85] : memref<1x128xf32, #tpu.memory_space<vmem>>, vector<1x128xf32>
    %229 = vector.shape_cast %228 : vector<1x128xf32> to vector<128xf32>
    %230 = vector.shape_cast %229 : vector<128xf32> to vector<1x128xf32>
    %231 = vector.broadcast %230 : vector<1x128xf32> to vector<16x128xf32>
    %232 = arith.addf %227, %231 : vector<16x128xf32>
    %c0_86 = arith.constant 0 : index
    %c0_87 = arith.constant 0 : index
    %233 = vector.load %arg25[%c0_86, %c0_87] : memref<128x128xf32, #tpu.memory_space<vmem>>, vector<128x128xf32>
    %cst_88 = arith.constant dense<0.000000e+00> : vector<16x128xf32>
    %234 = tpu.matmul %225, %233, %cst_88 {dimension_numbers = #tpu.dot_dimension_numbers<[1], [0], [0], [1], [0, 0, 1, 1], [], []>} : vector<16x128xf32>, vector<128x128xf32>, vector<16x128xf32> -> vector<16x128xf32>
    %c0_89 = arith.constant 0 : index
    %c0_90 = arith.constant 0 : index
    %235 = vector.load %arg26[%c0_89, %c0_90] : memref<1x128xf32, #tpu.memory_space<vmem>>, vector<1x128xf32>
    %236 = vector.shape_cast %235 : vector<1x128xf32> to vector<128xf32>
    %237 = vector.shape_cast %236 : vector<128xf32> to vector<1x128xf32>
    %238 = vector.broadcast %237 : vector<1x128xf32> to vector<16x128xf32>
    %239 = arith.addf %234, %238 : vector<16x128xf32>
    %c0_91 = arith.constant 0 : index
    %c0_92 = arith.constant 0 : index
    %c0_93 = arith.constant 0 : index
    %240 = vector.load %arg27[%c0_91, %c0_92, %c0_93] : memref<1x16x128xf32, #tpu.memory_space<vmem>>, vector<1x16x128xf32>
    %241 = vector.shape_cast %240 : vector<1x16x128xf32> to vector<16x128xf32>
    %242 = vector.shape_cast %232 : vector<16x128xf32> to vector<1x16x128xf32>
    tpu.vector_store %arg27[%c0_91, %c0_92, %c0_93], %242 {strides = array<i32>} : memref<1x16x128xf32, #tpu.memory_space<vmem>>, vector<1x16x128xf32>,
    %c0_94 = arith.constant 0 : index
    %c0_95 = arith.constant 0 : index
    %c0_96 = arith.constant 0 : index
    %243 = vector.load %arg28[%c0_94, %c0_95, %c0_96] : memref<1x16x128xf32, #tpu.memory_space<vmem>>, vector<1x16x128xf32>
    %244 = vector.shape_cast %243 : vector<1x16x128xf32> to vector<16x128xf32>
    %245 = vector.shape_cast %239 : vector<16x128xf32> to vector<1x16x128xf32>
    tpu.vector_store %arg28[%c0_94, %c0_95, %c0_96], %245 {strides = array<i32>} : memref<1x16x128xf32, #tpu.memory_space<vmem>>, vector<1x16x128xf32>,
    return
  }
  func.func @transform_0(%arg0: i32, %arg1: i32) -> (i32, i32, i32) {
    %c0_i32 = arith.constant 0 : i32
    %c0_i32_0 = arith.constant 0 : i32
    %c0_i32_1 = arith.constant 0 : i32
    return %arg0, %c0_i32, %c0_i32_0 : i32, i32, i32
  }
  func.func @transform_1(%arg0: i32, %arg1: i32) -> (i32, i32) {
    %c0_i32 = arith.constant 0 : i32
    %c0_i32_0 = arith.constant 0 : i32
    %c0_i32_1 = arith.constant 0 : i32
    return %c0_i32, %c0_i32_0 : i32, i32
  }
  func.func @transform_2(%arg0: i32, %arg1: i32) -> (i32, i32) {
    %c0_i32 = arith.constant 0 : i32
    %c0_i32_0 = arith.constant 0 : i32
    %c0_i32_1 = arith.constant 0 : i32
    return %c0_i32, %c0_i32_0 : i32, i32
  }
  func.func @transform_3(%arg0: i32, %arg1: i32) -> (i32, i32) {
    %c0_i32 = arith.constant 0 : i32
    %c0_i32_0 = arith.constant 0 : i32
    %c0_i32_1 = arith.constant 0 : i32
    return %c0_i32, %c0_i32_0 : i32, i32
  }
  func.func @transform_4(%arg0: i32, %arg1: i32) -> (i32, i32) {
    %c0_i32 = arith.constant 0 : i32
    %c0_i32_0 = arith.constant 0 : i32
    %c0_i32_1 = arith.constant 0 : i32
    return %c0_i32, %c0_i32_0 : i32, i32
  }
  func.func @transform_5(%arg0: i32, %arg1: i32) -> (i32, i32) {
    %c0_i32 = arith.constant 0 : i32
    %c0_i32_0 = arith.constant 0 : i32
    %c0_i32_1 = arith.constant 0 : i32
    return %c0_i32, %c0_i32_0 : i32, i32
  }
  func.func @transform_6(%arg0: i32, %arg1: i32) -> (i32, i32) {
    %c0_i32 = arith.constant 0 : i32
    %c0_i32_0 = arith.constant 0 : i32
    %c0_i32_1 = arith.constant 0 : i32
    return %c0_i32, %c0_i32_0 : i32, i32
  }
  func.func @transform_7(%arg0: i32, %arg1: i32) -> (i32, i32) {
    %c0_i32 = arith.constant 0 : i32
    %c0_i32_0 = arith.constant 0 : i32
    %c0_i32_1 = arith.constant 0 : i32
    return %c0_i32, %c0_i32_0 : i32, i32
  }
  func.func @transform_8(%arg0: i32, %arg1: i32) -> (i32, i32) {
    %c0_i32 = arith.constant 0 : i32
    %c0_i32_0 = arith.constant 0 : i32
    %c0_i32_1 = arith.constant 0 : i32
    return %c0_i32, %c0_i32_0 : i32, i32
  }
  func.func @transform_9(%arg0: i32, %arg1: i32) -> (i32, i32) {
    %c0_i32 = arith.constant 0 : i32
    %c0_i32_0 = arith.constant 0 : i32
    %c0_i32_1 = arith.constant 0 : i32
    return %c0_i32, %c0_i32_0 : i32, i32
  }
  func.func @transform_10(%arg0: i32, %arg1: i32) -> (i32, i32) {
    %c0_i32 = arith.constant 0 : i32
    %c0_i32_0 = arith.constant 0 : i32
    %c0_i32_1 = arith.constant 0 : i32
    return %c0_i32, %c0_i32_0 : i32, i32
  }
  func.func @transform_11(%arg0: i32, %arg1: i32) -> (i32, i32) {
    %c0_i32 = arith.constant 0 : i32
    %c0_i32_0 = arith.constant 0 : i32
    %c0_i32_1 = arith.constant 0 : i32
    return %c0_i32, %c0_i32_0 : i32, i32
  }
  func.func @transform_12(%arg0: i32, %arg1: i32) -> (i32, i32) {
    %c0_i32 = arith.constant 0 : i32
    %c0_i32_0 = arith.constant 0 : i32
    %c0_i32_1 = arith.constant 0 : i32
    return %c0_i32, %c0_i32_0 : i32, i32
  }
  func.func @transform_13(%arg0: i32, %arg1: i32) -> (i32, i32) {
    %c0_i32 = arith.constant 0 : i32
    %c0_i32_0 = arith.constant 0 : i32
    %c0_i32_1 = arith.constant 0 : i32
    return %c0_i32, %c0_i32_0 : i32, i32
  }
  func.func @transform_14(%arg0: i32, %arg1: i32) -> (i32, i32) {
    %c0_i32 = arith.constant 0 : i32
    %c0_i32_0 = arith.constant 0 : i32
    %c0_i32_1 = arith.constant 0 : i32
    return %c0_i32, %c0_i32_0 : i32, i32
  }
  func.func @transform_15(%arg0: i32, %arg1: i32) -> (i32, i32) {
    %c0_i32 = arith.constant 0 : i32
    %c0_i32_0 = arith.constant 0 : i32
    %c0_i32_1 = arith.constant 0 : i32
    return %c0_i32, %c0_i32_0 : i32, i32
  }
  func.func @transform_16(%arg0: i32, %arg1: i32) -> (i32, i32) {
    %c0_i32 = arith.constant 0 : i32
    %c0_i32_0 = arith.constant 0 : i32
    %c0_i32_1 = arith.constant 0 : i32
    return %c0_i32, %c0_i32_0 : i32, i32
  }
  func.func @transform_17(%arg0: i32, %arg1: i32) -> (i32, i32) {
    %c0_i32 = arith.constant 0 : i32
    %c0_i32_0 = arith.constant 0 : i32
    %c0_i32_1 = arith.constant 0 : i32
    return %c0_i32, %c0_i32_0 : i32, i32
  }
  func.func @transform_18(%arg0: i32, %arg1: i32) -> (i32, i32) {
    %c0_i32 = arith.constant 0 : i32
    %c0_i32_0 = arith.constant 0 : i32
    %c0_i32_1 = arith.constant 0 : i32
    return %c0_i32, %c0_i32_0 : i32, i32
  }
  func.func @transform_19(%arg0: i32, %arg1: i32) -> (i32, i32) {
    %c0_i32 = arith.constant 0 : i32
    %c0_i32_0 = arith.constant 0 : i32
    %c0_i32_1 = arith.constant 0 : i32
    return %c0_i32, %c0_i32_0 : i32, i32
  }
  func.func @transform_20(%arg0: i32, %arg1: i32) -> (i32, i32) {
    %c0_i32 = arith.constant 0 : i32
    %c0_i32_0 = arith.constant 0 : i32
    %c0_i32_1 = arith.constant 0 : i32
    return %c0_i32, %c0_i32_0 : i32, i32
  }
  func.func @transform_21(%arg0: i32, %arg1: i32) -> (i32, i32) {
    %c0_i32 = arith.constant 0 : i32
    %c0_i32_0 = arith.constant 0 : i32
    %c0_i32_1 = arith.constant 0 : i32
    return %c0_i32, %c0_i32_0 : i32, i32
  }
  func.func @transform_22(%arg0: i32, %arg1: i32) -> (i32, i32) {
    %c0_i32 = arith.constant 0 : i32
    %c0_i32_0 = arith.constant 0 : i32
    %c0_i32_1 = arith.constant 0 : i32
    return %c0_i32, %c0_i32_0 : i32, i32
  }
  func.func @transform_23(%arg0: i32, %arg1: i32) -> (i32, i32) {
    %c0_i32 = arith.constant 0 : i32
    %c0_i32_0 = arith.constant 0 : i32
    %c0_i32_1 = arith.constant 0 : i32
    return %c0_i32, %c0_i32_0 : i32, i32
  }
  func.func @transform_24(%arg0: i32, %arg1: i32) -> (i32, i32) {
    %c0_i32 = arith.constant 0 : i32
    %c0_i32_0 = arith.constant 0 : i32
    %c0_i32_1 = arith.constant 0 : i32
    return %c0_i32, %c0_i32_0 : i32, i32
  }
  func.func @transform_25(%arg0: i32, %arg1: i32) -> (i32, i32, i32) {
    %c0_i32 = arith.constant 0 : i32
    %c0_i32_0 = arith.constant 0 : i32
    return %arg0, %arg1, %c0_i32 : i32, i32, i32
  }
  func.func @transform_26(%arg0: i32, %arg1: i32) -> (i32, i32, i32) {
    %c0_i32 = arith.constant 0 : i32
    %c0_i32_0 = arith.constant 0 : i32
    return %arg0, %arg1, %c0_i32 : i32, i32, i32
  }
}

</mosaic_0001>

<bundles_post_ra>
// kernel: acoustic_encoder_pallas.1
= control target key start
LH: loop header
LB: loop body
LE: loop exit
PB: predicated region body
PF: predicated region fallthrough
CT: control target
= control target key end

     0   :  { %s3627_s0 = inlined_call_operand.vmem [shape: f32[2,32,128], index: 0, kind: input, shape index: {}]   ;;  %s3628_s1 = inlined_call_operand.vmem [shape: f32[3,128], index: 1, kind: input, shape index: {}]   ;;  %s3629_s2 = inlined_call_operand.vmem [shape: f32[1,128], index: 2, kind: input, shape index: {}]   ;;  %s3630_s3 = inlined_call_operand.vmem [shape: f32[128,128], index: 3, kind: input, shape index: {}]   ;;  %s3631_s4 = inlined_call_operand.vmem [shape: f32[1,128], index: 4, kind: input, shape index: {}]   ;;  %s3632_s5 = inlined_call_operand.vmem [shape: f32[3,128], index: 5, kind: input, shape index: {}]   ;;  %s3633_s6 = inlined_call_operand.vmem [shape: f32[1,128], index: 6, kind: input, shape index: {}]   ;;  %s3634_s7 = inlined_call_operand.vmem [shape: f32[128,128], index: 7, kind: input, shape index: {}]   ;;  %s3635_s8 = inlined_call_operand.vmem [shape: f32[1,128], index: 8, kind: input, shape index: {}]   ;;  %s3636_s9 = inlined_call_operand.vmem [shape: f32[3,128], index: 9, kind: input, shape index: {}]   ;;  %s3637_s10 = inlined_call_operand.vmem [shape: f32[1,128], index: 10, kind: input, shape index: {}]   ;;  %s3638_s11 = inlined_call_operand.vmem [shape: f32[128,128], index: 11, kind: input, shape index: {}]   ;;  %s3639_s12 = inlined_call_operand.vmem [shape: f32[1,128], index: 12, kind: input, shape index: {}]   ;;  %s3640_s13 = inlined_call_operand.vmem [shape: f32[3,128], index: 13, kind: input, shape index: {}]   ;;  %s3641_s14 = inlined_call_operand.vmem [shape: f32[1,128], index: 14, kind: input, shape index: {}]   ;;  %s3642_s15 = inlined_call_operand.vmem [shape: f32[128,128], index: 15, kind: input, shape index: {}]   ;;  %s3643_s16 = inlined_call_operand.vmem [shape: f32[1,128], index: 16, kind: input, shape index: {}]   ;;  %s3644_s17 = inlined_call_operand.vmem [shape: f32[3,128], index: 17, kind: input, shape index: {}]   ;;  %s3645_s18 = inlined_call_operand.vmem [shape: f32[1,128], index: 18, kind: input, shape index: {}]   ;;  %s3646_s19 = inlined_call_operand.vmem [shape: f32[128,128], index: 19, kind: input, shape index: {}]   ;;  %s3647_s20 = inlined_call_operand.vmem [shape: f32[1,128], index: 20, kind: input, shape index: {}]   ;;  %s3648_s21 = inlined_call_operand.vmem [shape: f32[128,128], index: 21, kind: input, shape index: {}]   ;;  %s3649_s22 = inlined_call_operand.vmem [shape: f32[1,128], index: 22, kind: input, shape index: {}]   ;;  %s3650_s23 = inlined_call_operand.vmem [shape: f32[128,128], index: 23, kind: input, shape index: {}]   ;;  %s3651_s24 = inlined_call_operand.vmem [shape: f32[1,128], index: 24, kind: input, shape index: {}]   ;;  %s3652_s25 = inlined_call_operand.hbm [shape: f32[2,16,128], index: 25, kind: output, shape index: {0}]   ;;  %s3653_s26 = inlined_call_operand.hbm [shape: f32[2,16,128], index: 26, kind: output, shape index: {1}]  }
   0x1   :  { %3674 = sst [smem:[#allocation16_spill]] %s3627_s0 }
   0x2   :  { %3675 = sst [smem:[#allocation17_spill]] %s3628_s1 }
   0x3   :  { %3676 = sst [smem:[#allocation18_spill]] %s3629_s2 }
   0x4   :  { %3677 = sst [smem:[#allocation19_spill]] %s3630_s3 }
   0x5   :  { %3678 = sst [smem:[#allocation20_spill]] %s3631_s4 }
   0x6   :  { %3679 = sst [smem:[#allocation21_spill]] %s3632_s5 }
   0x7   :  { %3680 = sst [smem:[#allocation22_spill]] %s3633_s6 }
   0x8   :  { %3681 = sst [smem:[#allocation23_spill]] %s3634_s7 }
   0x9   :  { %3682 = sst [smem:[#allocation24_spill]] %s3635_s8 }
   0xa   :  { %3683 = sst [smem:[#allocation25_spill]] %s3636_s9 }
   0xb   :  { %3684 = sst [smem:[#allocation26_spill]] %s3637_s10 }
   0xc   :  { %3685 = sst [smem:[#allocation27_spill]] %s3638_s11 }
   0xd   :  { %3686 = sst [smem:[#allocation28_spill]] %s3639_s12 }
   0xe   :  { %3687 = sst [smem:[#allocation29_spill]] %s3651_s24 }
   0xf   :  { %3688 = sst [smem:[#allocation30_spill]] %s3652_s25 }
  0x10   :  { %3689 = sst [smem:[#allocation31_spill]] %s3653_s26 }
  0x11   :  { %32 = vsyncpa [#allocation3], 0 }
  0x12   :  { %34 = vsyncpa [#allocation3 + $0x1], 0 }
  0x13   :  { %35 = vsyncpa [#allocation5], 0 }
  0x14   :  { %37 = vsyncpa [#allocation5 + $0x1], 0  ;;  %s2955_s27 = smov 0   ;;  %s2957_s3 = smov 0  }
  0x15   :  { %s2959_s7 = smov 0   ;;  %s2961_s28 = smov 0  }
  0x16   :  { %s2963_s8 = smov 0   ;;  %s2965_s4 = smov 0  }
  0x17 LB: > { %3690 = sst [smem:[#allocation8_spill]] %s2792_s27  ;;  %s2195_s29 = sadd.s32 4294967295, %s2812_s4   ;;  %s2812_s4 = sphi %s2965_s4, %s43_s4   ;;  %s2808_s8 = sphi %s2963_s8, %s3726_s8   ;;  %s2804_s28 = sphi %s2961_s28, %s3725_s28   ;;  %s2800_s7 = sphi %s2959_s7, %s3724_s7   ;;  %s2796_s3 = sphi %s2957_s3, %s3728_s3   ;;  %s2792_s27 = sphi %s2955_s27, %s3727_s27  }
  0x18   : > { %3691 = sst [smem:[#allocation9_spill]] %s2800_s7  ;;  %s2196_s0 = sadd.s32 4294967294, %s2812_s4  }
  0x19   : > { %3692 = sst [smem:[#allocation10_spill]] %s2808_s8  ;;  %s55_s9 = sadd.s32 1, %s2808_s8 }
  0x1a   : > { %3693 = sst [smem:[#allocation11_spill]] %s2812_s4  ;;  %s594_s30 = sadd.s32 1, %s2800_s7 }
  0x1b   : > { %p57_p0 = scmp.ge.s32.totalorder %s55_s9, 2  ;;  %p604_p1 = scmp.ne.s32.totalorder %s2800_s7, %s2796_s3 }
  0x1c   : > { %p605_p2 = scmp.eq.s32.totalorder %s2195_s29, 1  ;;  %p610_p3 = scmp.ne.s32.totalorder %s2796_s3, %s2792_s27 }
  0x1d   : > { %s3730_s9 = smov (%p57_p0, %s55_s9), 0  ;;  %p611_p5 = scmp.eq.s32.totalorder %s2196_s0, 1 }
  0x1e   : > { %3694 = sst [smem:[#allocation12_spill]] %s3730_s9  ;;  %p2995_p4 = por %p605_p2, %p604_p1 }
  0x1f   : > { %s589_s5 = ssub.s32 %s2808_s8, %s3730_s9  ;;  %p2199_p6 = scmp.ge.s32.totalorder %s2812_s4, 1 }
  0x20   : > { %s3695_s2 = scalar_select %p2995_p4, 1, 0 }
  0x21   : > { %p592_p7 = scmp.eq.s32.totalorder %s589_s5, 0  ;;  %p3002_p8 = por %p611_p5, %p610_p3 }
  0x22   : > { %3696 = sst [smem:[#allocation13_spill]] %s3695_s2  ;;  %p737_p9 = scmp.lt.s32.totalorder %s2812_s4, 3 }
  0x23   : > { %s3697_s10 = scalar_select %p3002_p8, 1, 0 }
  0x24   : > { %s3008_s6 = scalar_select %p592_p7, %s2800_s7, %s594_s30  }
  0x25   : > { %3698 = sst [smem:[#allocation14_spill]] %s3697_s10  ;;  %p738_p10 = pnand %p2199_p6, %p737_p9 }
  0x26   : > { %3699 = sst [smem:[#allocation15_spill]] %s3008_s6  ;;  %p812_p11 = scmp.lt.s32.totalorder (!%p738_p10), %s2804_s28, 1 }
  0x27   : > { %741 = sbr.rel (%p738_p10) target bundleno = 1363 (0x553), region = 120  ;;  %s3700_s27 = sld [smem:[#allocation19_spill]] (!%p738_p10) }
  0x28   : > { %s3702_s7 = sld [smem:[#allocation16_spill]] (!%p738_p10)  ;;  %s2240_s29 = sshll.u32 (!%p738_p10), %s2804_s28, 8 }
  0x29   : > { %s3703_s5 = sld [smem:[#allocation17_spill]] (!%p738_p10)  ;;  %s2816_s6 = smov (!%p738_p10), [#allocation2]  }
  0x2a   : > { %s3704_s4 = sld [smem:[#allocation23_spill]] (!%p738_p10) }
  0x2b   : > { %s3706_s24 = sld [smem:[#allocation18_spill]] (!%p738_p10) }
  0x2c   : > { %s813_s30 = scalar_select %p812_p11, %s2804_s28, 1  ;;  %vm847_vm0 = vcmask 1046528   ;;  %vm876_vm1 = vcmask 1045504   ;;  %vm2815_vm6 = vmmov 0   ;;  %vm1861_vm11 = vcmask 1044480  }
  0x2d   : > { %s3701_s26 = smov %s3700_s27  ;;  %v918_v0 = vld [vmem:[%s3700_s27 + $0x78] sm:$0xff]  ;;  %s3707_s11 = sld [smem:[#allocation27_spill]] }
  0x2e   : > { %v917_v1 = vld [vmem:[%s3701_s26 + $0x70] sm:$0xff]  ;;  %2376 = vmatprep.subr.mxu0 %v918_v0  ;;  %v916_v2 = vld [vmem:[%s3701_s26 + $0x68] sm:$0xff]  ;;  %v915_v3 = vld [vmem:[%s3701_s26 + $0x60] sm:$0xff]  ;;  %s2239_s1 = sshll.u32 %s813_s30, 5  ;;  %s3708_s25 = sld [smem:[#allocation20_spill]] }
  0x2f   : > { %2377 = vmatpush3.msra.mxu0 %v918_v0  ;;  %v914_v4 = vld [vmem:[%s3701_s26 + $0x58] sm:$0xff]  ;;  %s816_s10 = scalar_lea.vmem %s3702_s7, %s2239_s1  ;;  %v3033_v5 = vld [vmem:[%s3703_s5] ss:$0 sm:$0xff]  ;;  %v2205_v6 = vld [vmem:[%s3703_s5 + $0x1] ss:$0 sm:$0xff]  ;;  %s3709_s9 = sld [smem:[#allocation21_spill]] }
  0x30   : > { %2378 = vmatprep.subr.mxu0 %v917_v1  ;;  %v821_v7 = vld [vmem:[%s816_s10] sm:$0xff]  ;;  %v822_v8 = vld [vmem:[%s816_s10 + $0x8] sm:$0xff]  ;;  %v913_v10 = vld [vmem:[%s3701_s26 + $0x50] sm:$0xff]  ;;  %s3705_s2 = smov %s3704_s4  ;;  %s3711_s1 = sld [smem:[#allocation24_spill]] }
  0x31   : > { %2379 = vmatpush3.msra.mxu0 %v917_v1  ;;  %v2206_v9 = vld [vmem:[%s3703_s5 + $0x2] ss:$0 sm:$0xff]  ;;  %v839_v11 = vmul.f32 %v2205_v6, %v821_v7  ;;  %v840_v12 = vmul.f32 %v2205_v6, %v822_v8  ;;  %v823_v14 = vld [vmem:[%s816_s10 + $0x10] sm:$0xff]  ;;  %v830_v15 = vmul.f32 %v3033_v5, %v821_v7  ;;  %v824_v17 = vld [vmem:[%s816_s10 + $0x18] sm:$0xff]  ;;  %v831_v42 = vmul.f32 %v3033_v5, %v822_v8  ;;  %s3712_s0 = sld [smem:[#allocation25_spill]]  ;;  %s3531_s10 = sand.u32 1, %s2796_s3  }
  0x32   : > { %2380 = vmatprep.subr.mxu0 %v916_v2  ;;  %v868_v13 = vmul.f32 %v2206_v9, %v821_v7  ;;  %v3045_v16 = vmul.f32 %v2206_v9, %v822_v8  ;;  %v1137_v18 = vld [vmem:[%s3704_s4 + $0x78] sm:$0xff]  ;;  %v1136_v19 = vld [vmem:[%s3705_s2 + $0x70] sm:$0xff]  ;;  %v912_v23 = vld [vmem:[%s3701_s26 + $0x48] sm:$0xff]  ;;  %v841_v25 = vmul.f32 %v2205_v6, %v823_v14  ;;  %v842_v27 = vmul.f32 %v2205_v6, %v824_v17  ;;  %s3710_s4 = sld [smem:[#allocation22_spill]]  ;;  %s2200_s8 = sshll.u32 %s3531_s10, 4 }
  0x33   : > { %2381 = vmatpush3.msra.mxu0 %v916_v2  ;;  %v848_v20 = vrot.slane %v839_v11, 1  ;;  %v849_v21 = vrot.slane %v840_v12, 1  ;;  %2414 = vmatprep.subr.mxu1 %v1137_v18  ;;  %v1135_v28 = vld [vmem:[%s3705_s2 + $0x68] sm:$0xff]  ;;  %v911_v29 = vld [vmem:[%s3701_s26 + $0x40] sm:$0xff]  ;;  %v910_v33 = vld [vmem:[%s3701_s26 + $0x38] sm:$0xff]  ;;  %v870_v36 = vmul.f32 %v2206_v9, %v823_v14  ;;  %v871_v39 = vmul.f32 %v2206_v9, %v824_v17  ;;  %s3713_s7 = sld [smem:[#allocation26_spill]] }
  0x34   : > { %2382 = vmatprep.subr.mxu0 %v915_v3  ;;  %v877_v22 = vrot.slane %v868_v13, 2  ;;  %v878_v24 = vrot.slane %v3045_v16, 2  ;;  %2415 = vmatpush3.msra.mxu1 %v1137_v18  ;;  %v3068_v32 = vld [vmem:[%s3706_s24] ss:$0 sm:$0xff]  ;;  %v851_v35 = vrot.slane %v841_v25, 1  ;;  %v853_v38 = vrot.slane %v842_v27, 1 }
  0x35   : > { %2383 = vmatpush3.msra.mxu0 %v915_v3  ;;  %v850_v26 = vsel %vm847_vm0, %v848_v20, %v849_v21  ;;  %2416 = vmatprep.subr.mxu1 %v1136_v19  ;;  %v1134_v37 = vld [vmem:[%s3705_s2 + $0x60] sm:$0xff]  ;;  %v909_v40 = vld [vmem:[%s3701_s26 + $0x30] sm:$0xff]  ;;  %v1133_v43 = vld [vmem:[%s3705_s2 + $0x58] sm:$0xff]  ;;  %v880_v46 = vrot.slane %v870_v36, 2  ;;  %v832_v47 = vmul.f32 %v3033_v5, %v823_v14  ;;  %v882_v49 = vrot.slane %v871_v39, 2  ;;  %s3714_s12 = sld [smem:[#allocation28_spill]] }
  0x36   : > { %2384 = vmatprep.subr.mxu0 %v914_v4  ;;  %v859_v30 = vadd.f32 %v850_v26, %v830_v15  ;;  %v879_v31 = vsel %vm876_vm1, %v877_v22, %v878_v24  ;;  %2417 = vmatpush3.msra.mxu1 %v1136_v19  ;;  %v908_v44 = vld [vmem:[%s3701_s26 + $0x28] sm:$0xff]  ;;  %v852_v45 = vsel %vm847_vm0, %v849_v21, %v851_v35  ;;  %v1132_v50 = vld [vmem:[%s3705_s2 + $0x50] sm:$0xff]  ;;  %v907_v51 = vld [vmem:[%s3701_s26 + $0x20] sm:$0xff]  ;;  %v1012_v20 = vlaneseq  ;;  %s3717_s27 = sld [smem:[#allocation30_spill]]  ;;  %s2710_s30 = sshll.u32 %s2816_s6, 4  ;;  %s2711_s30 = int_to_ptr.vmem [resolvable:$false] %s2710_s30 }
  0x37   : > { %2385 = vmatpush3.msra.mxu0 %v914_v4  ;;  %2418 = vmatprep.subr.mxu1 %v1135_v28  ;;  %v854_v48 = vsel %vm847_vm0, %v851_v35, %v853_v38  ;;  %v860_v52 = vadd.f32 %v852_v45, %v831_v42  ;;  %v833_v53 = vmul.f32 %v3033_v5, %v824_v17  ;;  %v906_v54 = vld [vmem:[%s3701_s26 + $0x18] sm:$0xff]  ;;  %v905_v58 = vld [vmem:[%s3701_s26 + $0x10] sm:$0xff]  ;;  %v904_v61 = vld [vmem:[%s3701_s26 + $0x8] sm:$0xff]  ;;  %s3719_s5 = sld [smem:[#allocation31_spill]] }
  0x38   : > { %2386 = vmatprep.subr.mxu0 %v913_v10  ;;  %v888_v34 = vadd.f32 %v879_v31, %v859_v30  ;;  %2419 = vmatpush3.msra.mxu1 %v1135_v28  ;;  %v881_v55 = vsel %vm876_vm1, %v878_v24, %v880_v46  ;;  %v861_v56 = vadd.f32 %v854_v48, %v832_v47  ;;  %v903_v63 = vld [vmem:[%s3701_s26] sm:$0xff]  ;;  %v1131_v4 = vld [vmem:[%s3705_s2 + $0x48] sm:$0xff]  ;;  %v1129_v6 = vld [vmem:[%s3705_s2 + $0x38] sm:$0xff]  ;;  %v3162_v21 = vshrl.u32 %v1012_v20, 7 }
  0x39   : > { %2387 = vmatpush3.msra.mxu0 %v913_v10  ;;  %2420 = vmatprep.subr.mxu1 %v1134_v37  ;;  %v883_v57 = vsel %vm876_vm1, %v880_v46, %v882_v49  ;;  %v889_v59 = vadd.f32 %v881_v55, %v860_v52  ;;  %v862_v60 = vadd.f32 %v853_v38, %v833_v53  ;;  %v1130_v5 = vld [vmem:[%s3705_s2 + $0x40] sm:$0xff]  ;;  %v1128_v7 = vld [vmem:[%s3705_s2 + $0x30] sm:$0xff]  ;;  %v1127_v8 = vld [vmem:[%s3705_s2 + $0x28] sm:$0xff] }
  0x3a   : > { %2388 = vmatprep.subr.mxu0 %v912_v23  ;;  %v899_v41 = vadd.f32 %v3068_v32, %v888_v34  ;;  %2421 = vmatpush3.msra.mxu1 %v1134_v37  ;;  %v890_v62 = vadd.f32 %v883_v57, %v861_v56  ;;  %v1126_v9 = vld [vmem:[%s3705_s2 + $0x20] sm:$0xff]  ;;  %v1125_v10 = vld [vmem:[%s3705_s2 + $0x18] sm:$0xff]  ;;  %v1124_v11 = vld [vmem:[%s3705_s2 + $0x10] sm:$0xff]  ;;  %v3169_v24 = vadd.s32 16, %v3162_v21 }
  0x3b   : > { %2389 = vmatpush3.msra.mxu0 %v912_v23  ;;  %2422 = vmatprep.subr.mxu1 %v1133_v43  ;;  %v900_v0 = vadd.f32 %v3068_v32, %v889_v59  ;;  %v891_v1 = vadd.f32 %v882_v49, %v862_v60  ;;  %v1123_v12 = vld [vmem:[%s3705_s2 + $0x8] sm:$0xff]  ;;  %v1122_v13 = vld [vmem:[%s3705_s2] sm:$0xff]  ;;  %v1351_v14 = vld [vmem:[%s3707_s11 + $0x78] sm:$0xff]  ;;  %v1018_v23 = vadd.s32 4294967289, %v3162_v21 }
  0x3c   : > { %2390 = vmatprep.subr.mxu0 %v911_v29  ;;  %2408 = vmatprep.mubr.f32.mxu0 %v899_v41  ;;  %v901_v2 = vadd.f32 %v3068_v32, %v890_v62  ;;  %v1350_v15 = vld [vmem:[%s3707_s11 + $0x70] sm:$0xff]  ;;  %v1349_v16 = vld [vmem:[%s3707_s11 + $0x68] sm:$0xff]  ;;  %v1348_v17 = vld [vmem:[%s3707_s11 + $0x60] sm:$0xff]  ;;  %s3718_s24 = smov %s3717_s27 }
  0x3d   : > { %2391 = vmatpush3.msra.mxu0 %v911_v29  ;;  %2423 = vmatpush3.msra.mxu1 %v1133_v43  ;;  %v902_v3 = vadd.f32 %v3068_v32, %v891_v1  ;;  %v1347_v18 = vld [vmem:[%s3707_s11 + $0x58] sm:$0xff]  ;;  %v1346_v19 = vld [vmem:[%s3707_s11 + $0x50] sm:$0xff]  ;;  %v2208_v22 = vld [vmem:[%s3708_s25] ss:$0 sm:$0xff]  ;;  %vm1022_vm2 = vcmp.ge.s32.totalorder %v1018_v23, 0  ;;  %v1020_v29 = vadd.s32 4294967289, %v3169_v24 }
  0x3e   : > { %2392 = vmatprep.subr.mxu0 %v910_v33  ;;  %2424 = vmatprep.subr.mxu1 %v1132_v50  ;;  %v2210_v27 = vld [vmem:[%s3709_s9 + $0x1] ss:$0 sm:$0xff]  ;;  %v2211_v30 = vld [vmem:[%s3709_s9 + $0x2] ss:$0 sm:$0xff]  ;;  %v2209_v41 = vld [vmem:[%s3709_s9] ss:$0 sm:$0xff]  ;;  %s3553_s9 = scalar_lea.hbm %s3719_s5, %s2240_s29 }
  0x3f   : > { %2393 = vmatpush3.msra.mxu0 %v910_v33  ;;  %2425 = vmatpush3.msra.mxu1 %v1132_v50  ;;  %v1063_v35 = vmul.f32 0.0, %v2210_v27  ;;  %vm1028_vm3 = vcmp.lt.s32.totalorder %v1020_v29, 16  ;;  %v1091_v45 = vmul.f32 0.0, %v2211_v30  ;;  %v1054_v49 = vmul.f32 0.0, %v2209_v41  ;;  %v1338_v20 = vld [vmem:[%s3707_s11 + $0x10] sm:$0xff]  ;;  %v1336_v23 = vld [vmem:[%s3707_s11] sm:$0xff] }
  0x40   : > { %2394 = vmatprep.subr.mxu0 %v909_v40  ;;  %2426 = vmatprep.subr.mxu1 %v1131_v4  ;;  %v1556_v29 = vld [vmem:[%s3642_s15 + $0x60] sm:$0xff]  ;;  %s811_s25 = scalar_lea.vmem [#allocation4], %s2200_s8 }
  0x41   : > { %2395 = vmatpush3.msra.mxu0 %v909_v40  ;;  %2427 = vmatpush3.msra.mxu1 %v1131_v4  ;;  %v1073_v48 = vrot.slane %v1063_v35, 1  ;;  %v1101_v59 = vrot.slane %v1091_v45, 2 }
  0x42   : > { %2396 = vmatprep.subr.mxu0 %v908_v44  ;;  %2428 = vmatprep.subr.mxu1 %v1130_v5 }
  0x43   : > { %2397 = vmatpush3.msra.mxu0 %v908_v44  ;;  %2429 = vmatpush3.msra.mxu1 %v1130_v5 }
  0x44   : > { %2398 = vmatprep.subr.mxu0 %v907_v51  ;;  %2430 = vmatprep.subr.mxu1 %v1129_v6 }
  0x45   : > { %2399 = vmatpush3.msra.mxu0 %v907_v51  ;;  %2431 = vmatpush3.msra.mxu1 %v1129_v6 }
  0x46   : > { %2400 = vmatprep.subr.mxu0 %v906_v54  ;;  %2432 = vmatprep.subr.mxu1 %v1128_v7 }
  0x47   : > { %2401 = vmatpush3.msra.mxu0 %v906_v54  ;;  %2433 = vmatpush3.msra.mxu1 %v1128_v7 }
  0x48   : > { %2402 = vmatprep.subr.mxu0 %v905_v58  ;;  %2434 = vmatprep.subr.mxu1 %v1127_v8 }
  0x49   : > { %2403 = vmatpush3.msra.mxu0 %v905_v58  ;;  %2435 = vmatpush3.msra.mxu1 %v1127_v8  ;;  %v2212_v58 = vld [vmem:[%s3710_s4] ss:$0 sm:$0xff]  ;;  %s804_s4 = scalar_lea.vmem [#allocation2], %s2200_s8 }
  0x4a   : > { %2404 = vmatprep.subr.mxu0 %v904_v61  ;;  %2436 = vmatprep.subr.mxu1 %v1126_v9 }
  0x4b   : > { %2405 = vmatpush3.msra.mxu0 %v904_v61  ;;  %2437 = vmatpush3.msra.mxu1 %v1126_v9 }
  0x4c   : > { %2406 = vmatprep.subr.mxu0 %v903_v63  ;;  %2438 = vmatprep.subr.mxu1 %v1125_v10 }
  0x4d   : > { %2407 = vmatpush3.msra.mxu0 %v903_v63  ;;  %2439 = vmatpush3.msra.mxu1 %v1125_v10  ;;  %v1082_v63 = vadd.f32 %v1073_v48, %v1054_v49 }
  0x4e   : > { %2409 = vmatmul.mubr.f32.vlgmr.msra.gmra.mxu0 %v900_v0  ;;  %2440 = vmatprep.subr.mxu1 %v1124_v11 }
  0x4f   : > { %2411 = vmatprep.mubr.f32.mxu0 %v901_v2  ;;  %2441 = vmatpush3.msra.mxu1 %v1124_v11  ;;  %v1110_v9 = vadd.f32 %v1101_v59, %v1082_v63 }
  0x50   : > { %2442 = vmatprep.subr.mxu1 %v1123_v12  ;;  %2452 = vmatprep.subr.mxu0 %v1351_v14 }
  0x51   : > { %2443 = vmatpush3.msra.mxu1 %v1123_v12  ;;  %2453 = vmatpush3.msra.mxu0 %v1351_v14  ;;  %v1121_v12 = vadd.f32 %v2212_v58, %v1110_v9  ;;  %v1344_v14 = vld [vmem:[%s3707_s11 + $0x40] sm:$0xff] }
  0x52   : > { %2412 = vmatmul.mubr.f32.gmra.mxu0 %v902_v3  ;;  %2444 = vmatprep.subr.mxu1 %v1122_v13 }
  0x53   : > { %2445 = vmatpush3.msra.mxu1 %v1122_v13  ;;  %2454 = vmatprep.subr.mxu0 %v1350_v15  ;;  %v1345_v13 = vld [vmem:[%s3707_s11 + $0x48] sm:$0xff] }
  0x54   : > { %2455 = vmatpush3.msra.mxu0 %v1350_v15  ;;  %v1343_v15 = vld [vmem:[%s3707_s11 + $0x38] sm:$0xff] }
  0x55   : > { %2456 = vmatprep.subr.mxu0 %v1349_v16 }
  0x56   : > { %2457 = vmatpush3.msra.mxu0 %v1349_v16  ;;  %v1342_v16 = vld [vmem:[%s3707_s11 + $0x30] sm:$0xff] }
  0x57   : > { %2458 = vmatprep.subr.mxu0 %v1348_v17 }
  0x58   : > { %2459 = vmatpush3.msra.mxu0 %v1348_v17  ;;  %v1341_v17 = vld [vmem:[%s3707_s11 + $0x28] sm:$0xff] }
  0x59   : > { %2460 = vmatprep.subr.mxu0 %v1347_v18 }
  0x5a   : > { %2461 = vmatpush3.msra.mxu0 %v1347_v18  ;;  %v1340_v18 = vld [vmem:[%s3707_s11 + $0x20] sm:$0xff] }
  0x5b   : > { %2462 = vmatprep.subr.mxu0 %v1346_v19 }
  0x5c   : > { %2463 = vmatpush3.msra.mxu0 %v1346_v19  ;;  %v1339_v19 = vld [vmem:[%s3707_s11 + $0x18] sm:$0xff] }
  0x5d   : > { %2464 = vmatprep.subr.mxu0 %v1345_v13 }
  0x5e   : > { %2465 = vmatpush3.msra.mxu0 %v1345_v13 }
  0x5f   : > { %2466 = vmatprep.subr.mxu0 %v1344_v14 }
  0x60   : > { %2467 = vmatpush3.msra.mxu0 %v1344_v14 }
  0x61   : > { %2468 = vmatprep.subr.mxu0 %v1343_v15 }
  0x62   : > { %2469 = vmatpush3.msra.mxu0 %v1343_v15 }
  0x63   : > { %2470 = vmatprep.subr.mxu0 %v1342_v16 }
  0x64   : > { %2471 = vmatpush3.msra.mxu0 %v1342_v16 }
  0x65   : > { %2472 = vmatprep.subr.mxu0 %v1341_v17 }
  0x66   : > { %2473 = vmatpush3.msra.mxu0 %v1341_v17 }
  0x67   : > { %2474 = vmatprep.subr.mxu0 %v1340_v18 }
  0x68   : > { %2475 = vmatpush3.msra.mxu0 %v1340_v18 }
  0x69   : > { %2476 = vmatprep.subr.mxu0 %v1339_v19 }
  0x6a   : > { %2477 = vmatpush3.msra.mxu0 %v1339_v19 }
  0x6b   : > { %2478 = vmatprep.subr.mxu0 %v1338_v20 }
  0x6c   : > { %2479 = vmatpush3.msra.mxu0 %v1338_v20 }
 0x10e   : > { %v2410_v25 = vpop.f32.mrf.mxu0 }
 0x10f   : > { %v998_v26 = vadd.f32 %v2410_v25, %v2208_v22  ;;  %v1559_v25 = vld [vmem:[%s3642_s15 + $0x78] sm:$0xff] }
 0x110   : > { %v992_v28 = vpop.f32.mrf.mxu0 }
 0x111   : > { %v993_v31 = vadd.f32 %v2208_v22, %v992_v28  ;;  %v1061_v32 = vmul.f32 %v2210_v27, %v998_v26  ;;  %v1089_v36 = vmul.f32 %v2211_v30, %v998_v26  ;;  %v1052_v60 = vmul.f32 %v2209_v41, %v998_v26  ;;  %v1557_v28 = vld [vmem:[%s3642_s15 + $0x68] sm:$0xff] }
 0x112   : > { %v2413_v33 = vpop.f32.mrf.mxu0  ;;  %v2814_v26 = vmov 0.0  }
 0x113   : > { %v1042_v34 = vsel %vm1022_vm2, %v993_v31, 0.0  ;;  %v1069_v42 = vrot.slane %v1061_v32, 1  ;;  %v1097_v50 = vrot.slane %v1089_v36, 2  ;;  %2490 = vmatprep.subr.mxu1 %v2814_v26  ;;  %v1554_v31 = vld [vmem:[%s3642_s15 + $0x50] sm:$0xff]  ;;  %v1553_v32 = vld [vmem:[%s3642_s15 + $0x48] sm:$0xff] }
 0x114   : > { %v1060_v37 = vmul.f32 %v2210_v27, %v1042_v34  ;;  %v1088_v38 = vmul.f32 %v2211_v30, %v1042_v34  ;;  %v1002_v39 = vpop.f32.mrf.mxu0  ;;  %v1051_v46 = vmul.f32 %v2209_v41, %v1042_v34  ;;  %v2213_v33 = vld [vmem:[%s3711_s1] ss:$0 sm:$0xff]  ;;  %v1232_v34 = vadd.s32 4294967290, %v3162_v21  ;;  %s2067_s1 = sshll.u32 %s804_s4, 4  ;;  %s3541_s1 = int_to_ptr.vmem [resolvable:$true] %s2067_s1 }
 0x115   : > { %v1003_v40 = vadd.f32 %v2208_v22, %v1002_v39  ;;  %v1337_v22 = vld [vmem:[%s3707_s11 + $0x8] sm:$0xff]  ;;  %v1234_v39 = vadd.s32 4294967290, %v3169_v24  ;;  %s2047_s11 = scalar_lea.sflag [#allocation3], %s3531_s10  ;;  %p2713_p1 = scmp.lt.s32.totalorder %s3541_s1, %s2711_s30 }
 0x116   : > { %v1068_v43 = vrot.slane %v1060_v37, 1  ;;  %v1096_v44 = vrot.slane %v1088_v38, 2  ;;  %2480 = vmatprep.subr.mxu0 %v1337_v22  ;;  %v2215_v37 = vld [vmem:[%s3712_s0 + $0x1] ss:$0 sm:$0xff]  ;;  %vm1236_vm4 = vcmp.ge.s32.totalorder %v1232_v34, 0 }
 0x117   : > { %v1044_v47 = vsel %vm1028_vm3, %v1003_v40, 0.0  ;;  %2481 = vmatpush3.msra.mxu0 %v1337_v22  ;;  %v2216_v40 = vld [vmem:[%s3712_s0 + $0x2] ss:$0 sm:$0xff]  ;;  %v1277_v45 = vmul.f32 0.0, %v2215_v37  ;;  %vm1242_vm5 = vcmp.lt.s32.totalorder %v1234_v39, 16  ;;  %v1743_v39 = vld [vmem:[%s3646_s19 + $0x58] sm:$0xff] }
 0x118   : > { %v1062_v51 = vmul.f32 %v2210_v27, %v1044_v47  ;;  %v1090_v52 = vmul.f32 %v2211_v30, %v1044_v47  ;;  %v1070_v53 = vsel %vm847_vm0, %v1068_v43, %v1069_v42  ;;  %v1098_v57 = vsel %vm876_vm1, %v1096_v44, %v1097_v50  ;;  %2482 = vmatprep.subr.mxu0 %v1336_v23  ;;  %v1558_v27 = vld [vmem:[%s3642_s15 + $0x70] sm:$0xff]  ;;  %v1555_v30 = vld [vmem:[%s3642_s15 + $0x58] sm:$0xff]  ;;  %v1544_v34 = vld [vmem:[%s3642_s15] sm:$0xff] }
 0x119   : > { %v1079_v54 = vadd.f32 %v1070_v53, %v1051_v46  ;;  %v1053_v61 = vmul.f32 %v2209_v41, %v1044_v47  ;;  %2483 = vmatpush3.msra.mxu0 %v1336_v23 }
 0x11a   : > { %v1071_v55 = vrot.slane %v1062_v51, 1  ;;  %v1099_v56 = vrot.slane %v1090_v52, 2  ;;  %2531 = vmatprep.subr.mxu0 %v2814_v26  ;;  %v2214_v51 = vld [vmem:[%s3712_s0] ss:$0 sm:$0xff]  ;;  %s2085_s0 = sshll.u32 %s811_s25, 4  ;;  %s3548_s0 = int_to_ptr.vmem [resolvable:$true] %s2085_s0 }
 0x11b   : > { %v1107_v62 = vadd.f32 %v1098_v57, %v1079_v54 }
 0x11c   : > { %v1074_v0 = vsel %vm847_vm0, %v1071_v55, %v1073_v48  ;;  %v1072_v1 = vsel %vm847_vm0, %v1069_v42, %v1071_v55  ;;  %v1100_v5 = vsel %vm876_vm1, %v1097_v50, %v1099_v56  ;;  %v1102_v6 = vsel %vm876_vm1, %v1099_v56, %v1101_v59 }
 0x11d   : > { %v1081_v2 = vadd.f32 %v1074_v0, %v1053_v61  ;;  %v1118_v3 = vadd.f32 %v2212_v58, %v1107_v62  ;;  %v1080_v4 = vadd.f32 %v1072_v1, %v1052_v60  ;;  %v1305_v55 = vmul.f32 0.0, %v2216_v40 }
 0x11e   : > { %v1268_v59 = vmul.f32 0.0, %v2214_v51 }
 0x11f   : > { %2446 = vmatprep.mubr.f32.mxu1 %v1118_v3  ;;  %v1108_v7 = vadd.f32 %v1100_v5, %v1080_v4  ;;  %v1109_v8 = vadd.f32 %v1102_v6, %v1081_v2  ;;  %v2217_v4 = vld [vmem:[%s3713_s7] ss:$0 sm:$0xff]  ;;  %v1315_v5 = vrot.slane %v1305_v55, 2  ;;  %s3715_s7 = sld [smem:[#allocation29_spill]] }
 0x121   : > { %v1119_v10 = vadd.f32 %v2212_v58, %v1108_v7  ;;  %v1120_v11 = vadd.f32 %v2212_v58, %v1109_v8  ;;  %v1287_v58 = vrot.slane %v1277_v45, 1 }
 0x123   : > { %2447 = vmatmul.mubr.f32.vlgmr.msra.gmra.mxu1 %v1119_v10  ;;  %v1296_v9 = vadd.f32 %v1287_v58, %v1268_v59 }
 0x124   : > { %2449 = vmatprep.mubr.f32.mxu1 %v1120_v11  ;;  %2491 = vmatpush3.msra.mxu1 %v1559_v25  ;;  %v1552_v25 = vld [vmem:[%s3642_s15 + $0x40] sm:$0xff] }
 0x125   : > { %2492 = vmatprep.subr.mxu1 %v2814_v26  ;;  %v1324_v19 = vadd.f32 %v1315_v5, %v1296_v9 }
 0x126   : > { %2493 = vmatpush3.msra.mxu1 %v1558_v27  ;;  %v1551_v27 = vld [vmem:[%s3642_s15 + $0x38] sm:$0xff] }
 0x127   : > { %2450 = vmatmul.mubr.f32.gmra.mxu1 %v1121_v12  ;;  %2494 = vmatprep.subr.mxu1 %v2814_v26  ;;  %v1335_v23 = vadd.f32 %v2217_v4, %v1324_v19 }
 0x128   : > { %2495 = vmatpush3.msra.mxu1 %v1557_v28  ;;  %v1550_v28 = vld [vmem:[%s3642_s15 + $0x30] sm:$0xff]  ;;  %2522 = vmatprep.mubr.msk.f32.mxu1 %vm2815_vm6, %v2814_v26 }
 0x129   : > { %2496 = vmatprep.subr.mxu1 %v2814_v26 }
 0x12a   : > { %2497 = vmatpush3.msra.mxu1 %v1556_v29  ;;  %v1549_v29 = vld [vmem:[%s3642_s15 + $0x28] sm:$0xff] }
 0x12b   : > { %2498 = vmatprep.subr.mxu1 %v2814_v26 }
 0x12c   : > { %2499 = vmatpush3.msra.mxu1 %v1555_v30  ;;  %v1548_v30 = vld [vmem:[%s3642_s15 + $0x20] sm:$0xff] }
 0x12d   : > { %2500 = vmatprep.subr.mxu1 %v2814_v26 }
 0x12e   : > { %2501 = vmatpush3.msra.mxu1 %v1554_v31  ;;  %v1547_v31 = vld [vmem:[%s3642_s15 + $0x18] sm:$0xff] }
 0x12f   : > { %2502 = vmatprep.subr.mxu1 %v2814_v26 }
 0x130   : > { %2503 = vmatpush3.msra.mxu1 %v1553_v32  ;;  %v1546_v32 = vld [vmem:[%s3642_s15 + $0x10] sm:$0xff] }
 0x131   : > { %2504 = vmatprep.subr.mxu1 %v2814_v26 }
 0x132   : > { %2505 = vmatpush3.msra.mxu1 %v1552_v25 }
 0x133   : > { %2506 = vmatprep.subr.mxu1 %v2814_v26 }
 0x134   : > { %2507 = vmatpush3.msra.mxu1 %v1551_v27 }
 0x135   : > { %2508 = vmatprep.subr.mxu1 %v2814_v26 }
 0x136   : > { %2509 = vmatpush3.msra.mxu1 %v1550_v28 }
 0x137   : > { %2510 = vmatprep.subr.mxu1 %v2814_v26 }
 0x138   : > { %2511 = vmatpush3.msra.mxu1 %v1549_v29 }
 0x139   : > { %2512 = vmatprep.subr.mxu1 %v2814_v26 }
 0x13a   : > { %2513 = vmatpush3.msra.mxu1 %v1548_v30 }
 0x13b   : > { %2514 = vmatprep.subr.mxu1 %v2814_v26 }
 0x13c   : > { %2515 = vmatpush3.msra.mxu1 %v1547_v31  ;;  %v1740_v31 = vld [vmem:[%s3646_s19 + $0x40] sm:$0xff] }
 0x13d   : > { %2516 = vmatprep.subr.mxu1 %v2814_v26 }
 0x13e   : > { %2517 = vmatpush3.msra.mxu1 %v1546_v32  ;;  %v1739_v32 = vld [vmem:[%s3646_s19 + $0x38] sm:$0xff] }
 0x13f   : > { %2518 = vmatprep.subr.mxu1 %v2814_v26 }
 0x1e3   : > { %v2448_v35 = vpop.f32.mrf.mxu1 }
 0x1e4   : > { %v1217_v36 = vadd.f32 %v2448_v35, %v2213_v33  ;;  %v1747_v35 = vld [vmem:[%s3646_s19 + $0x78] sm:$0xff] }
 0x1e5   : > { %v1211_v38 = vpop.f32.mrf.mxu1 }
 0x1e6   : > { %v1212_v41 = vadd.f32 %v2213_v33, %v1211_v38  ;;  %v1275_v42 = vmul.f32 %v2215_v37, %v1217_v36  ;;  %v1303_v46 = vmul.f32 %v2216_v40, %v1217_v36  ;;  %v1266_v6 = vmul.f32 %v2214_v51, %v1217_v36  ;;  %v1746_v36 = vld [vmem:[%s3646_s19 + $0x70] sm:$0xff]  ;;  %v1744_v38 = vld [vmem:[%s3646_s19 + $0x60] sm:$0xff] }
 0x1e7   : > { %v2451_v43 = vpop.f32.mrf.mxu1 }
 0x1e8   : > { %v1256_v44 = vsel %vm1236_vm4, %v1212_v41, 0.0  ;;  %v1283_v52 = vrot.slane %v1275_v42, 1  ;;  %v1311_v60 = vrot.slane %v1303_v46, 2  ;;  %v1741_v41 = vld [vmem:[%s3646_s19 + $0x48] sm:$0xff]  ;;  %v2218_v42 = vld [vmem:[%s3714_s12] ss:$0 sm:$0xff] }
 0x1e9   : > { %v1274_v47 = vmul.f32 %v2215_v37, %v1256_v44  ;;  %v1302_v48 = vmul.f32 %v2216_v40, %v1256_v44  ;;  %v1221_v49 = vpop.f32.mrf.mxu1  ;;  %v1265_v56 = vmul.f32 %v2214_v51, %v1256_v44  ;;  %v1446_v43 = vadd.s32 4294967291, %v3162_v21  ;;  %v2220_v46 = vld [vmem:[%s3640_s13 + $0x1] ss:$0 sm:$0xff]  ;;  %s2706_s12 = scalar_lea.vmem %s3541_s1, 256 }
 0x1ea   : > { %v1222_v50 = vadd.f32 %v2213_v33, %v1221_v49  ;;  %v1545_v33 = vld [vmem:[%s3642_s15 + $0x8] sm:$0xff]  ;;  %v2221_v49 = vld [vmem:[%s3640_s13 + $0x2] ss:$0 sm:$0xff]  ;;  %p2707_p12 = scmp.ne.s32.totalorder %s3541_s1, %s2706_s12 }
 0x1eb   : > { %v1282_v53 = vrot.slane %v1274_v47, 1  ;;  %v1310_v54 = vrot.slane %v1302_v48, 2  ;;  %2519 = vmatpush3.msra.mxu1 %v1545_v33  ;;  %v1448_v47 = vadd.s32 4294967291, %v3169_v24  ;;  %vm1450_vm7 = vcmp.ge.s32.totalorder %v1446_v43, 0  ;;  %v1738_v33 = vld [vmem:[%s3646_s19 + $0x30] sm:$0xff]  ;;  %v1848_v43 = vld [vmem:[%s3648_s21 + $0x68] sm:$0xff] }
 0x1ec   : > { %v1258_v57 = vsel %vm1242_vm5, %v1222_v50, 0.0  ;;  %2520 = vmatprep.subr.mxu1 %v2814_v26  ;;  %p2708_p13 = pnand %p2707_p12, %p2995_p4 }
 0x1ed   : > { %v1284_v61 = vsel %vm847_vm0, %v1282_v53, %v1283_v52  ;;  %v1276_v62 = vmul.f32 %v2215_v37, %v1258_v57  ;;  %v1304_v63 = vmul.f32 %v2216_v40, %v1258_v57  ;;  %v1312_v3 = vsel %vm876_vm1, %v1310_v54, %v1311_v60  ;;  %2521 = vmatpush3.msra.mxu1 %v1544_v34  ;;  %v1745_v37 = vld [vmem:[%s3646_s19 + $0x68] sm:$0xff]  ;;  %v1742_v40 = vld [vmem:[%s3646_s19 + $0x50] sm:$0xff] }
 0x1ee   : > { %v1293_v0 = vadd.f32 %v1284_v61, %v1265_v56  ;;  %v1267_v7 = vmul.f32 %v2214_v51, %v1258_v57  ;;  %vm1456_vm8 = vcmp.lt.s32.totalorder %v1448_v47, 16  ;;  %v1737_v34 = vld [vmem:[%s3646_s19 + $0x28] sm:$0xff]  ;;  %p2709_p0 = pneg %p2708_p13 }
 0x1ef   : > { %v1285_v1 = vrot.slane %v1276_v62, 1  ;;  %v1313_v2 = vrot.slane %v1304_v63, 2  ;;  %v1844_v47 = vld [vmem:[%s3648_s21 + $0x48] sm:$0xff] }
 0x1f0   : > { %v1321_v8 = vadd.f32 %v1312_v3, %v1293_v0 }
 0x1f1   : > { %v1286_v10 = vsel %vm847_vm0, %v1283_v52, %v1285_v1  ;;  %v1288_v11 = vsel %vm847_vm0, %v1285_v1, %v1287_v58  ;;  %v1314_v15 = vsel %vm876_vm1, %v1311_v60, %v1313_v2  ;;  %v1316_v16 = vsel %vm876_vm1, %v1313_v2, %v1315_v5  ;;  %v2219_v60 = vld [vmem:[%s3640_s13] ss:$0 sm:$0xff] }
 0x1f2   : > { %v1294_v12 = vadd.f32 %v1286_v10, %v1266_v6  ;;  %v1295_v13 = vadd.f32 %v1288_v11, %v1267_v7  ;;  %v1332_v14 = vadd.f32 %v2217_v4, %v1321_v8  ;;  %v1490_v58 = vmul.f32 0.0, %v2220_v46  ;;  %v2222_v10 = vld [vmem:[%s3641_s14] ss:$0 sm:$0xff] }
 0x1f3   : > { %v1516_v2 = vmul.f32 0.0, %v2221_v49 }
 0x1f4   : > { %v1322_v17 = vadd.f32 %v1314_v15, %v1294_v12  ;;  %2484 = vmatprep.mubr.f32.mxu0 %v1332_v14  ;;  %v1323_v18 = vadd.f32 %v1316_v16, %v1295_v13  ;;  %v1500_v6 = vrot.slane %v1490_v58, 1 }
 0x1f6   : > { %v1333_v20 = vadd.f32 %v2217_v4, %v1322_v17  ;;  %v1334_v22 = vadd.f32 %v2217_v4, %v1323_v18  ;;  %v1526_v18 = vrot.slane %v1516_v2, 2 }
 0x1f8   : > { %2485 = vmatmul.mubr.f32.vlgmr.msra.gmra.mxu0 %v1333_v20 }
 0x1f9   : > { %2487 = vmatprep.mubr.f32.mxu0 %v1334_v22  ;;  %2532 = vmatpush3.msra.mxu0 %v1747_v35  ;;  %v1736_v35 = vld [vmem:[%s3646_s19 + $0x20] sm:$0xff] }
 0x1fa   : > { %2533 = vmatprep.subr.mxu0 %v2814_v26 }
 0x1fb   : > { %2534 = vmatpush3.msra.mxu0 %v1746_v36  ;;  %v1735_v36 = vld [vmem:[%s3646_s19 + $0x18] sm:$0xff] }
 0x1fc   : > { %2488 = vmatmul.mubr.f32.gmra.mxu0 %v1335_v23  ;;  %2535 = vmatprep.subr.mxu0 %v2814_v26 }
 0x1fd   : > { %2563 = vmatprep.mubr.msk.f32.mxu0 %vm2815_vm6, %v2814_v26  ;;  %2536 = vmatpush3.msra.mxu0 %v1745_v37  ;;  %v1734_v37 = vld [vmem:[%s3646_s19 + $0x10] sm:$0xff] }
 0x1fe   : > { %2537 = vmatprep.subr.mxu0 %v2814_v26 }
 0x1ff   : > { %2538 = vmatpush3.msra.mxu0 %v1744_v38  ;;  %v1733_v38 = vld [vmem:[%s3646_s19 + $0x8] sm:$0xff] }
 0x200   : > { %2539 = vmatprep.subr.mxu0 %v2814_v26 }
 0x201   : > { %2540 = vmatpush3.msra.mxu0 %v1743_v39  ;;  %v1732_v39 = vld [vmem:[%s3646_s19] sm:$0xff] }
 0x202   : > { %2541 = vmatprep.subr.mxu0 %v2814_v26 }
 0x203   : > { %2542 = vmatpush3.msra.mxu0 %v1742_v40  ;;  %v1850_v40 = vld [vmem:[%s3648_s21 + $0x78] sm:$0xff] }
 0x204   : > { %2543 = vmatprep.subr.mxu0 %v2814_v26  ;;  %2572 = vmatprep.subr.mxu1 %v1850_v40 }
 0x205   : > { %2544 = vmatpush3.msra.mxu0 %v1741_v41  ;;  %v3408_v41 = vld [vmem:[%s3650_s23 + $0x78] sm:$0xff] }
 0x206   : > { %2545 = vmatprep.subr.mxu0 %v2814_v26 }
 0x207   : > { %2546 = vmatpush3.msra.mxu0 %v1740_v31  ;;  %v1957_v31 = vld [vmem:[%s3650_s23 + $0x68] sm:$0xff] }
 0x208   : > { %2547 = vmatprep.subr.mxu0 %v2814_v26 }
 0x209   : > { %2548 = vmatpush3.msra.mxu0 %v1739_v32 }
 0x20a   : > { %2549 = vmatprep.subr.mxu0 %v2814_v26 }
 0x20b   : > { %2550 = vmatpush3.msra.mxu0 %v1738_v33 }
 0x20c   : > { %2551 = vmatprep.subr.mxu0 %v2814_v26 }
 0x20d   : > { %2552 = vmatpush3.msra.mxu0 %v1737_v34  ;;  %v1956_v34 = vld [vmem:[%s3650_s23 + $0x60] sm:$0xff] }
 0x20e   : > { %2553 = vmatprep.subr.mxu0 %v2814_v26 }
 0x20f   : > { %2554 = vmatpush3.msra.mxu0 %v1736_v35  ;;  %v1955_v35 = vld [vmem:[%s3650_s23 + $0x58] sm:$0xff] }
 0x210   : > { %2555 = vmatprep.subr.mxu0 %v2814_v26 }
 0x211   : > { %2556 = vmatpush3.msra.mxu0 %v1735_v36 }
 0x212   : > { %2557 = vmatprep.subr.mxu0 %v2814_v26 }
 0x213   : > { %2558 = vmatpush3.msra.mxu0 %v1734_v37  ;;  %v1954_v37 = vld [vmem:[%s3650_s23 + $0x50] sm:$0xff] }
 0x214   : > { %2559 = vmatprep.subr.mxu0 %v2814_v26 }
 0x215   : > { %2560 = vmatpush3.msra.mxu0 %v1733_v38  ;;  %v1953_v38 = vld [vmem:[%s3650_s23 + $0x48] sm:$0xff] }
 0x216   : > { %2561 = vmatprep.subr.mxu0 %v2814_v26 }
 0x217   : > { %2562 = vmatpush3.msra.mxu0 %v1732_v39  ;;  %v1951_v39 = vld [vmem:[%s3650_s23 + $0x38] sm:$0xff] }
 0x218   : > { %2607 = vmatprep.subr.mxu0 %v3408_v41 }
 0x2b8   : > { %v2486_v44 = vpop.f32.mrf.mxu0 }
 0x2b9   : > { %v1431_v45 = vadd.f32 %v2486_v44, %v2218_v42  ;;  %v1847_v44 = vld [vmem:[%s3648_s21 + $0x60] sm:$0xff] }
 0x2ba   : > { %v1425_v48 = vpop.f32.mrf.mxu0 }
 0x2bb   : > { %v1426_v50 = vadd.f32 %v2218_v42, %v1425_v48  ;;  %v1488_v51 = vmul.f32 %v2220_v46, %v1431_v45  ;;  %v1514_v54 = vmul.f32 %v2221_v49, %v1431_v45  ;;  %v1480_v12 = vmul.f32 %v2219_v60, %v1431_v45  ;;  %v1846_v45 = vld [vmem:[%s3648_s21 + $0x58] sm:$0xff]  ;;  %v1843_v48 = vld [vmem:[%s3648_s21 + $0x40] sm:$0xff] }
 0x2bc   : > { %v2489_v52 = vpop.f32.mrf.mxu0 }
 0x2bd   : > { %v1470_v53 = vsel %vm1450_vm7, %v1426_v50, 0.0  ;;  %v1496_v61 = vrot.slane %v1488_v51, 1  ;;  %v1522_v3 = vrot.slane %v1514_v54, 2  ;;  %v1649_v50 = vadd.s32 4294967292, %v3162_v21  ;;  %v2223_v51 = vld [vmem:[%s3643_s16] ss:$0 sm:$0xff] }
 0x2be   : > { %v1487_v55 = vmul.f32 %v2220_v46, %v1470_v53  ;;  %v1513_v56 = vmul.f32 %v2221_v49, %v1470_v53  ;;  %v1435_v57 = vpop.f32.mrf.mxu0  ;;  %v1479_v0 = vmul.f32 %v2219_v60, %v1470_v53  ;;  %v2225_v54 = vld [vmem:[%s3644_s17 + $0x1] ss:$0 sm:$0xff]  ;;  %v1651_v21 = vadd.s32 4294967292, %v3169_v24 }
 0x2bf   : > { %v1436_v59 = vadd.f32 %v2218_v42, %v1435_v57  ;;  %v1849_v42 = vld [vmem:[%s3648_s21 + $0x70] sm:$0xff]  ;;  %vm1652_vm9 = vcmp.ge.s32.totalorder %v1649_v50, 0  ;;  %v2226_v57 = vld [vmem:[%s3644_s17 + $0x2] ss:$0 sm:$0xff]  ;;  %v1836_v50 = vld [vmem:[%s3648_s21 + $0x8] sm:$0xff] }
 0x2c0   : > { %v1495_v62 = vrot.slane %v1487_v55, 1  ;;  %v1521_v63 = vrot.slane %v1513_v56, 2  ;;  %vm1657_vm10 = vcmp.lt.s32.totalorder %v1651_v21, 16 }
 0x2c1   : > { %v1472_v1 = vsel %vm1456_vm8, %v1436_v59, 0.0 }
 0x2c2   : > { %v1497_v4 = vsel %vm847_vm0, %v1495_v62, %v1496_v61  ;;  %v1489_v5 = vmul.f32 %v2220_v46, %v1472_v1  ;;  %v1515_v8 = vmul.f32 %v2221_v49, %v1472_v1  ;;  %v1523_v9 = vsel %vm876_vm1, %v1521_v63, %v1522_v3  ;;  %v1845_v46 = vld [vmem:[%s3648_s21 + $0x50] sm:$0xff]  ;;  %v1842_v49 = vld [vmem:[%s3648_s21 + $0x38] sm:$0xff]  ;;  %v2224_v62 = vld [vmem:[%s3644_s17] ss:$0 sm:$0xff] }
 0x2c3   : > { %v1505_v7 = vadd.f32 %v1497_v4, %v1479_v0  ;;  %v1481_v14 = vmul.f32 %v2219_v60, %v1472_v1 }
 0x2c4   : > { %v1498_v11 = vrot.slane %v1489_v5, 1  ;;  %v1524_v15 = vrot.slane %v1515_v8, 2 }
 0x2c5   : > { %v1531_v13 = vadd.f32 %v1523_v9, %v1505_v7 }
 0x2c6   : > { %v1501_v16 = vsel %vm847_vm0, %v1498_v11, %v1500_v6  ;;  %v1499_v17 = vsel %vm847_vm0, %v1496_v61, %v1498_v11  ;;  %v1525_v23 = vsel %vm876_vm1, %v1522_v3, %v1524_v15  ;;  %v1527_v27 = vsel %vm876_vm1, %v1524_v15, %v1526_v18  ;;  %v2227_v15 = vld [vmem:[%s3645_s18] ss:$0 sm:$0xff] }
 0x2c7   : > { %v1541_v19 = vadd.f32 %v2222_v10, %v1531_v13  ;;  %v1507_v20 = vadd.f32 %v1501_v16, %v1481_v14  ;;  %v1506_v22 = vadd.f32 %v1499_v17, %v1480_v12 }
 0x2c9   : > { %2523 = vmatmul.mubr.f32.vlgmr.msra.gmra.mxu1 %v1541_v19  ;;  %v1532_v25 = vadd.f32 %v1525_v23, %v1506_v22  ;;  %v1533_v29 = vadd.f32 %v1527_v27, %v1507_v20 }
 0x2ca   : > { %2525 = vmatprep.mubr.msk.f32.mxu1 %vm2815_vm6, %v2814_v26  ;;  %2573 = vmatpush3.msra.mxu1 %v1850_v40  ;;  %v1841_v40 = vld [vmem:[%s3648_s21 + $0x30] sm:$0xff] }
 0x2cb   : > { %v1542_v28 = vadd.f32 %v2222_v10, %v1532_v25  ;;  %v1543_v30 = vadd.f32 %v2222_v10, %v1533_v29  ;;  %2574 = vmatprep.subr.mxu1 %v1849_v42 }
 0x2cc   : > { %2575 = vmatpush3.msra.mxu1 %v1849_v42  ;;  %v1840_v42 = vld [vmem:[%s3648_s21 + $0x28] sm:$0xff] }
 0x2cd   : > { %2526 = vmatmul.mubr.f32.gmra.mxu1 %v1542_v28  ;;  %2576 = vmatprep.subr.mxu1 %v1848_v43  ;;  %v1958_v28 = vld [vmem:[%s3650_s23 + $0x70] sm:$0xff] }
 0x2ce   : > { %2528 = vmatprep.mubr.msk.f32.mxu1 %vm2815_vm6, %v2814_v26  ;;  %2577 = vmatpush3.msra.mxu1 %v1848_v43  ;;  %v1949_v43 = vld [vmem:[%s3650_s23 + $0x28] sm:$0xff] }
 0x2cf   : > { %2578 = vmatprep.subr.mxu1 %v1847_v44 }
 0x2d0   : > { %2579 = vmatpush3.msra.mxu1 %v1847_v44  ;;  %v1839_v44 = vld [vmem:[%s3648_s21 + $0x20] sm:$0xff] }
 0x2d1   : > { %2529 = vmatmul.mubr.f32.gmra.mxu1 %v1543_v30  ;;  %2580 = vmatprep.subr.mxu1 %v1846_v45 }
 0x2d2   : > { %2581 = vmatpush3.msra.mxu1 %v1846_v45  ;;  %v1948_v45 = vld [vmem:[%s3650_s23 + $0x20] sm:$0xff] }
 0x2d3   : > { %2582 = vmatprep.subr.mxu1 %v1845_v46 }
 0x2d4   : > { %2583 = vmatpush3.msra.mxu1 %v1845_v46  ;;  %v1838_v46 = vld [vmem:[%s3648_s21 + $0x18] sm:$0xff] }
 0x2d5   : > { %2584 = vmatprep.subr.mxu1 %v1844_v47 }
 0x2d6   : > { %2585 = vmatpush3.msra.mxu1 %v1844_v47  ;;  %v1947_v47 = vld [vmem:[%s3650_s23 + $0x18] sm:$0xff] }
 0x2d7   : > { %2586 = vmatprep.subr.mxu1 %v1843_v48 }
 0x2d8   : > { %2587 = vmatpush3.msra.mxu1 %v1843_v48  ;;  %v1837_v48 = vld [vmem:[%s3648_s21 + $0x10] sm:$0xff] }
 0x2d9   : > { %2588 = vmatprep.subr.mxu1 %v1842_v49 }
 0x2da   : > { %2589 = vmatpush3.msra.mxu1 %v1842_v49  ;;  %v1946_v49 = vld [vmem:[%s3650_s23 + $0x10] sm:$0xff] }
 0x2db   : > { %2590 = vmatprep.subr.mxu1 %v1841_v40 }
 0x2dc   : > { %2591 = vmatpush3.msra.mxu1 %v1841_v40 }
 0x2dd   : > { %2592 = vmatprep.subr.mxu1 %v1840_v42 }
 0x2de   : > { %2593 = vmatpush3.msra.mxu1 %v1840_v42 }
 0x2df   : > { %2594 = vmatprep.subr.mxu1 %v1839_v44 }
 0x2e0   : > { %2595 = vmatpush3.msra.mxu1 %v1839_v44 }
 0x2e1   : > { %2596 = vmatprep.subr.mxu1 %v1838_v46 }
 0x2e2   : > { %2597 = vmatpush3.msra.mxu1 %v1838_v46 }
 0x2e3   : > { %2598 = vmatprep.subr.mxu1 %v1837_v48 }
 0x2e4   : > { %2599 = vmatpush3.msra.mxu1 %v1837_v48 }
 0x2e5   : > { %2600 = vmatprep.subr.mxu1 %v1836_v50 }
 0x2e6   : > { %2601 = vmatpush3.msra.mxu1 %v1836_v50 }
 0x389   : > { %v1633_v52 = vpop.f32.mrf.mxu1 }
 0x38a   : > { %v1634_v53 = vadd.f32 %v2223_v51, %v1633_v52  ;;  %v1835_v52 = vld [vmem:[%s3648_s21] sm:$0xff] }
 0x38b   : > { %v2524_v55 = vpop.f32.mrf.mxu1  ;;  %2602 = vmatprep.subr.mxu1 %v1835_v52 }
 0x38c   : > { %v1667_v56 = vsel %vm1652_vm9, %v1634_v53, 0.0  ;;  %v1944_v53 = vld [vmem:[%s3650_s23] sm:$0xff]  ;;  %2603 = vmatpush3.msra.mxu1 %v1835_v52 }
 0x38d   : > { %v1638_v58 = vpop.f32.mrf.mxu1  ;;  %v1683_v59 = vmul.f32 %v2225_v54, %v1667_v56  ;;  %v1705_v63 = vmul.f32 %v2226_v57, %v1667_v56  ;;  %v1675_v7 = vmul.f32 %v2224_v62, %v1667_v56  ;;  %v2228_v55 = vld [vmem:[%s3647_s20] ss:$0 sm:$0xff] }
 0x38e   : > { %v1639_v60 = vadd.f32 %v2223_v51, %v1638_v58 }
 0x38f   : > { %v2527_v61 = vpop.f32.mrf.mxu1  ;;  %v1689_v3 = vrot.slane %v1683_v59, 1  ;;  %v1711_v9 = vrot.slane %v1705_v63, 2 }
 0x390   : > { %v1684_v0 = vmul.f32 %v2225_v54, %v1639_v60  ;;  %v1706_v1 = vmul.f32 %v2226_v57, %v1639_v60  ;;  %v1676_v19 = vmul.f32 %v2224_v62, %v1639_v60 }
 0x391   : > { %v1643_v2 = vpop.f32.mrf.mxu1 }
 0x392   : > { %v1690_v4 = vrot.slane %v1684_v0, 1  ;;  %v1712_v5 = vrot.slane %v1706_v1, 2  ;;  %v1644_v6 = vadd.f32 %v2223_v51, %v1643_v2  ;;  %v1945_v51 = vld [vmem:[%s3650_s23 + $0x8] sm:$0xff] }
 0x393   : > { %v2530_v8 = vpop.f32.mrf.mxu1 }
 0x394   : > { %v1691_v24 = vsel %vm847_vm0, %v1689_v3, %v1690_v4  ;;  %v1669_v10 = vsel %vm1657_vm10, %v1644_v6, 0.0  ;;  %v1713_v14 = vsel %vm876_vm1, %v1711_v9, %v1712_v5 }
 0x395   : > { %v1697_v11 = vadd.f32 %v1691_v24, %v1675_v7  ;;  %v1685_v12 = vmul.f32 %v2225_v54, %v1669_v10  ;;  %v1707_v13 = vmul.f32 %v2226_v57, %v1669_v10  ;;  %v1677_v20 = vmul.f32 %v2224_v62, %v1669_v10 }
 0x397   : > { %v1719_v16 = vadd.f32 %v1713_v14, %v1697_v11  ;;  %v1692_v17 = vrot.slane %v1685_v12, 1  ;;  %v1714_v18 = vrot.slane %v1707_v13, 2 }
 0x399   : > { %v1729_v22 = vadd.f32 %v2227_v15, %v1719_v16  ;;  %v1693_v23 = vsel %vm847_vm0, %v1690_v4, %v1692_v17  ;;  %v1699_v25 = vadd.f32 %v1692_v17, %v1677_v20  ;;  %v1715_v29 = vsel %vm876_vm1, %v1712_v5, %v1714_v18  ;;  %v2229_v4 = vld [vmem:[%s3649_s22] ss:$0 sm:$0xff] }
 0x39a   : > { %v1698_v27 = vadd.f32 %v1693_v23, %v1676_v19  ;;  %v2230_v5 = vld [vmem:[%s3715_s7] ss:$0 sm:$0xff]  ;;  %s3546_s7 = scalar_lea.hbm %s3717_s27, %s2240_s29  ;;  %s2712_s27 = scalar_lea.vmem %s2711_s30, 512 }
 0x39b   : > { %2564 = vmatmul.mubr.f32.vlgmr.msra.gmra.mxu0 %v1729_v22  ;;  %v1721_v33 = vadd.f32 %v1714_v18, %v1699_v25  ;;  %p2714_p2 = scmp.lt.s32.totalorder %s2712_s27, %s2706_s12 }
 0x39c   : > { %2566 = vmatprep.mubr.msk.f32.mxu0 %vm2815_vm6, %v2814_v26  ;;  %v1720_v30 = vadd.f32 %v1715_v29, %v1698_v27  ;;  %2608 = vmatpush3.msra.mxu0 %v3408_v41  ;;  %v1950_v41 = vld [vmem:[%s3650_s23 + $0x30] sm:$0xff] }
 0x39d   : > { %2609 = vmatprep.subr.mxu0 %v1958_v28  ;;  %v1731_v36 = vadd.f32 %v2227_v15, %v1721_v33  ;;  %p2715_p3 = por %p2714_p2, %p2713_p1 }
 0x39e   : > { %v1730_v32 = vadd.f32 %v2227_v15, %v1720_v30  ;;  %2610 = vmatpush3.msra.mxu0 %v1958_v28 }
 0x39f   : > { %2611 = vmatprep.subr.mxu0 %v1957_v31  ;;  %p2716_p5 = pnand %p2715_p3, %p2709_p0 }
 0x3a0   : > { %2567 = vmatmul.mubr.f32.gmra.mxu0 %v1730_v32 }
 0x3a1   : > { %2569 = vmatprep.mubr.msk.f32.mxu0 %vm2815_vm6, %v2814_v26  ;;  %2612 = vmatpush3.msra.mxu0 %v1957_v31  ;;  %v1952_v26 = vld [vmem:[%s3650_s23 + $0x40] sm:$0xff] }
 0x3a2   : > { %2613 = vmatprep.subr.mxu0 %v1956_v34 }
 0x3a3   : > { %2614 = vmatpush3.msra.mxu0 %v1956_v34 }
 0x3a4   : > { %2570 = vmatmul.mubr.f32.gmra.mxu0 %v1731_v36  ;;  %2615 = vmatprep.subr.mxu0 %v1955_v35 }
 0x3a5   : > { %2616 = vmatpush3.msra.mxu0 %v1955_v35 }
 0x3a6   : > { %2617 = vmatprep.subr.mxu0 %v1954_v37 }
 0x3a7   : > { %2618 = vmatpush3.msra.mxu0 %v1954_v37 }
 0x3a8   : > { %2619 = vmatprep.subr.mxu0 %v1953_v38 }
 0x3a9   : > { %2620 = vmatpush3.msra.mxu0 %v1953_v38 }
 0x3aa   : > { %2621 = vmatprep.subr.mxu0 %v1952_v26 }
 0x3ab   : > { %2622 = vmatpush3.msra.mxu0 %v1952_v26 }
 0x3ac   : > { %2623 = vmatprep.subr.mxu0 %v1951_v39 }
 0x3ad   : > { %2624 = vmatpush3.msra.mxu0 %v1951_v39 }
 0x3ae   : > { %2625 = vmatprep.subr.mxu0 %v1950_v41 }
 0x3af   : > { %2626 = vmatpush3.msra.mxu0 %v1950_v41 }
 0x3b0   : > { %2627 = vmatprep.subr.mxu0 %v1949_v43 }
 0x3b1   : > { %2628 = vmatpush3.msra.mxu0 %v1949_v43 }
 0x3b2   : > { %2629 = vmatprep.subr.mxu0 %v1948_v45 }
 0x3b3   : > { %2630 = vmatpush3.msra.mxu0 %v1948_v45 }
 0x3b4   : > { %2631 = vmatprep.subr.mxu0 %v1947_v47 }
 0x3b5   : > { %2632 = vmatpush3.msra.mxu0 %v1947_v47 }
 0x3b6   : > { %2633 = vmatprep.subr.mxu0 %v1946_v49 }
 0x3b7   : > { %2634 = vmatpush3.msra.mxu0 %v1946_v49 }
 0x3b8   : > { %2635 = vmatprep.subr.mxu0 %v1945_v51 }
 0x3b9   : > { %2636 = vmatpush3.msra.mxu0 %v1945_v51 }
 0x3ba   : > { %2637 = vmatprep.subr.mxu0 %v1944_v53 }
 0x3bb   : > { %2638 = vmatpush3.msra.mxu0 %v1944_v53 }
 0x45b   : > { %v1821_v54 = vpop.f32.mrf.mxu0 }
 0x45c   : > { %v1822_v57 = vadd.f32 %v2228_v55, %v1821_v54 }
 0x45d   : > { %v2565_v56 = vpop.f32.mrf.mxu0 }
 0x45e   : > { %v1862_v60 = vrot.slane %v1822_v57, 3 }
 0x460   : > { %v1826_v58 = vpop.f32.mrf.mxu0 }
 0x461   : > { %v1827_v21 = vadd.f32 %v2228_v55, %v1826_v58 }
 0x462   : > { %v2568_v59 = vpop.f32.mrf.mxu0 }
 0x463   : > { %v1863_v61 = vrot.slane %v1827_v21, 3 }
 0x464   : > { %v1831_v62 = vpop.f32.mrf.mxu0 }
 0x465   : > { %v1832_v63 = vadd.f32 %v2228_v55, %v1831_v62  ;;  %v1864_v0 = vsel %vm1861_vm11, %v1862_v60, %v1863_v61 }
 0x466   : > { %v2571_v1 = vpop.f32.mrf.mxu0  ;;  %2604 = vmatprep.mubr.f32.mxu1 %v1864_v0  ;;  %2639 = vmatprep.mubr.f32.mxu0 %v1864_v0 }
 0x467   : > { %v1865_v2 = vrot.slane %v1832_v63, 3 }
 0x469   : > { %v1866_v3 = vsel %vm1861_vm11, %v1863_v61, %v1865_v2 }
 0x46a   : > { %2605 = vmatmul.mubr.f32.vlgmr.msra.gmra.mxu1 %v1866_v3  ;;  %2640 = vmatmul.mubr.f32.vlgmr.msra.gmra.mxu0 %v1866_v3 }
 0x52a   : > { %v2606_v6 = vpop.f32.mrf.mxu1  ;;  %v2641_v7 = vpop.f32.mrf.mxu0 }
 0x52b   : > { %v1941_v8 = vadd.f32 %v2606_v6, %v2229_v4  ;;  %v2039_v9 = vadd.f32 %v2641_v7, %v2230_v5 }
 0x52c   : > { %v1935_v24 = vpop.f32.mrf.mxu1  ;;  %v2033_v10 = vpop.f32.mrf.mxu0 }
 0x52d   : > { %2043 = vst [vmem:[%s804_s4 + $0x8] sm:$0xff] %v1941_v8  ;;  %2045 = vst [vmem:[%s811_s25 + $0x8] sm:$0xff] %v2039_v9  ;;  %v1936_v11 = vadd.f32 %v2229_v4, %v1935_v24  ;;  %v2034_v12 = vadd.f32 %v2230_v5, %v2033_v10 }
 0x52f   : > { %2042 = vst [vmem:[%s804_s4] sm:$0xff] %v1936_v11  ;;  %2044 = vst [vmem:[%s811_s25] sm:$0xff] %v2034_v12 }
 0x530   : > { %2719 = shalt.err (!%p2716_p5)
}
 0x531   : > { %s2720_s4 = scalar_lea.hbm %s3546_s7, 256  ;;  %s2724_s28 = scalar_lea.hbm %s3718_s24, 512 }
 0x532   : > { %p2721_p6 = scmp.ne.s32.totalorder %s3546_s7, %s2720_s4  ;;  %p2725_p10 = scmp.lt.s32.totalorder %s3546_s7, %s3718_s24 }
 0x533   : > { %p2726_p11 = scmp.lt.s32.totalorder %s2724_s28, %s2720_s4 }
 0x534   : > { %p2722_p7 = pnand %p2721_p6, %p2995_p4 }
 0x535   : > { %p2727_p12 = por %p2726_p11, %p2725_p10 }
 0x536   : > { %p2723_p9 = pneg %p2722_p7 }
 0x538   : > { %p2728_p13 = pnand %p2727_p12, %p2723_p9 }
 0x53a   : > { %2731 = shalt.err (!%p2728_p13)
}
 0x53b   : > { %s2817_s12 = smov 128   ;;  %s2818_s30 = smov 8  }
 0x53c   : > { %2642 = dma.vmem_to_hbm [thread:$0]  (%p2995_p4), %s3541_s1, 256, %s3546_s7, %s2047_s11, %s2817_s12, %s2817_s12, %s2818_s30  }
 0x53d   : > { %s2052_s27 = scalar_lea.sflag [#allocation5], %s3531_s10  ;;  %s2732_s4 = scalar_lea.vmem %s3548_s0, 256 }
 0x53e   : > { %p2733_p0 = scmp.ne.s32.totalorder %s3548_s0, %s2732_s4  ;;  %s2819_s29 = smov [#allocation4]  }
 0x53f   : > { %s2736_s25 = sshll.u32 %s2819_s29, 4  ;;  %s2737_s25 = int_to_ptr.vmem [resolvable:$false] %s2736_s25 }
 0x540   : > { %p2734_p1 = pnand %p2733_p0, %p2995_p4  ;;  %s2738_s28 = scalar_lea.vmem %s2737_s25, 512 }
 0x541   : > { %p2739_p3 = scmp.lt.s32.totalorder %s3548_s0, %s2737_s25  ;;  %p2740_p5 = scmp.lt.s32.totalorder %s2738_s28, %s2732_s4 }
 0x542   : > { %p2735_p2 = pneg %p2734_p1 }
 0x543   : > { %p2741_p6 = por %p2740_p5, %p2739_p3 }
 0x545   : > { %p2742_p7 = pnand %p2741_p6, %p2735_p2 }
 0x547   : > { %2745 = shalt.err (!%p2742_p7)
}
 0x548   : > { %s2746_s11 = scalar_lea.hbm %s3553_s9, 256  ;;  %s2750_s7 = scalar_lea.hbm %s3719_s5, 512 }
 0x549   : > { %p2747_p9 = scmp.ne.s32.totalorder %s3553_s9, %s2746_s11  ;;  %p2751_p12 = scmp.lt.s32.totalorder %s3553_s9, %s3719_s5 }
 0x54a   : > { %p2752_p13 = scmp.lt.s32.totalorder %s2750_s7, %s2746_s11 }
 0x54b   : > { %p2748_p10 = pnand %p2747_p9, %p2995_p4 }
 0x54c   : > { %p2753_p0 = por %p2752_p13, %p2751_p12 }
 0x54d   : > { %p2749_p11 = pneg %p2748_p10 }
 0x54f   : > { %p2754_p1 = pnand %p2753_p0, %p2749_p11 }
 0x551   : > { %2757 = shalt.err (!%p2754_p1)
}
 0x552   : > { %2643 = dma.vmem_to_hbm [thread:$0]  (%p2995_p4), %s3548_s0, 256, %s3553_s9, %s2052_s27, %s2817_s12, %s2817_s12, %s2818_s30  }
 0x553 PF: > { %s3720_s4 = sld [smem:[#allocation11_spill]] }
 0x554   : > { %s3721_s29 = sld [smem:[#allocation8_spill]] }
 0x559   : > { %p2653_p2 = scmp.ge.s32.totalorder %s3720_s4, 2 }
 0x55a   : > { %s2100_s28 = sand.u32 1, %s3721_s29  }
 0x55b   : > { %p2647_p3 = pnand %p2653_p2, %p3002_p8  ;;  %s2101_s11 = scalar_lea.sflag [#allocation3], %s2100_s28 }
 0x55d   : > { %p2648_p5 = pneg %p2647_p3 }
 0x55f   : > { %2783 = dma.done.wait (%p2648_p5), %s2101_s11, 256  }
 0x560   : > { %2785 = vsyncadd (%p2648_p5), %s2101_s11, 4294967040  ;;  %s2110_s10 = scalar_lea.sflag [#allocation5], %s2100_s28 }
 0x561   : > { %2787 = dma.done.wait (%p2648_p5), %s2110_s10, 256  }
 0x562   : > { %2789 = vsyncadd (%p2648_p5), %s2110_s10, 4294967040  ;;  %s43_s4 = sadd.s32 1, %s3720_s4   ;;  %s3723_s2 = sld [smem:[#allocation9_spill]] }
 0x563   : > { %p40_p6 = scmp.ge.s32.totalorder %s43_s4, 4   ;;  %s3724_s7 = sld [smem:[#allocation15_spill]] }
 0x564   : > { %s3725_s28 = sld [smem:[#allocation10_spill]]  ;;  %s3727_s27 = smov %s2796_s3 }
 0x565   : > { %s3726_s8 = sld [smem:[#allocation12_spill]]  ;;  %42 = sbr.rel (!%p40_p6) target bundleno = 23 (0x17), region = 173 }
 0x568   : > { %s3728_s3 = smov %s3723_s2 }
 0x56a   :  { %2115 = vsyncpa [#allocation3], 1 }
 0x56b   :  { %2117 = vsyncpa [#allocation3 + $0x1], 1 }
 0x56c   :  { %2118 = vsyncpa [#allocation5], 1 }
 0x56d   :  { %2120 = vsyncpa [#allocation5 + $0x1], 1 }

</bundles_post_ra>
